<compile_context>
chip_gen: v7x
topology: tpu7x:2x2x1
jax: 0.10.0
libtpu: 0.0.40
codegen_flags: <defaults>
</compile_context>

<pallas_src>
import jax
import jax.numpy as jnp
from jax import lax
from jax.experimental import pallas as pl
from jax.experimental.pallas import tpu as pltpu


def trajectory_discriminator_kernel(
        x2_ref,                 # (L*Np, 2D): rows [t*Np:(t+1)*Np] = [ x[t] | x[L-1-t] ]
        wih2_ref,               # (2D, 8Hp) fused block-structured input weights (both dirs)
        whh2_ref,               # (2Hp, 8Hp) fused block-diagonal hidden weights (both dirs)
        bg_ref,                 # (1, 8Hp)  fused gate biases (bias_ih + bias_hh, both dirs)
        w1_ref, b1_ref,         # sequence_cls Linear(H, H): w1 padded to (Hp, H)
        gamma_ref, beta_ref,    # sequence_cls LayerNorm(H)
        w2_ref, b2o_ref,        # sequence_cls Linear(H, 1): w2 passed as (1, H)
        out_ref):               # (Np, 1) discriminator score (wrapper slices back to N)
    LNp = x2_ref.shape[0]
    Np = out_ref.shape[0]
    L = LNp // Np
    Hp = whh2_ref.shape[0] // 2
    G = 2 * Hp                  # one gate slab [fwd | rev] = 128 lanes (vreg-aligned)

    # ---- Hoisted input projection: one f32 MXU matmul for all steps & both directions. ----
    # Gate-column layout (8Hp wide): [i_f,i_r, f_f,f_r, o_f,o_r, g_f,g_r], each Hp wide.
    xp = (jnp.dot(x2_ref[...], wih2_ref[...], preferred_element_type=jnp.float32)
          + bg_ref[...])                                    # (L*Np, 8Hp)

    # Recurrent weight loaded & cast to bf16 once (loop-invariant, bf16-native MXU path).
    whh_bf = whh2_ref[...].astype(jnp.bfloat16)             # (2Hp, 8Hp)

    # ---- t = 0: hc = cc = 0 -> skip the recurrent matmul and the f*cc term entirely. ----
    g0 = xp[0:Np, :]
    sfo = jax.nn.sigmoid(g0[:, :3 * G])                     # [i | f | o] in one EUP sweep
    gg = jnp.tanh(g0[:, 3 * G:])
    cc = sfo[:, 0:G] * gg                                   # i * g
    hc = sfo[:, 2 * G:3 * G] * jnp.tanh(cc)                 # o * tanh(c)

    # ---- Recurrence: fused bidirectional state in registers, fully unrolled. ----
    for t in range(1, L):                                   # L static & small -> unrolled
        gates = (xp[t * Np:(t + 1) * Np, :]                 # sublane-aligned row slice
                 + jnp.dot(hc.astype(jnp.bfloat16), whh_bf,
                           preferred_element_type=jnp.float32))      # (Np, 8Hp)
        sfo = jax.nn.sigmoid(gates[:, :3 * G])              # vreg-aligned 3*G lanes
        gg = jnp.tanh(gates[:, 3 * G:])
        i = sfo[:, 0:G]
        f = sfo[:, G:2 * G]
        o = sfo[:, 2 * G:3 * G]
        cc = f * cc + i * gg
        hc = o * jnp.tanh(cc)

    # bi_lstm=True: torch.sum(final_hidden_state, dim=0) over the two directions.
    # Padded columns H:Hp are exactly zero by construction.
    h = hc[:, :Hp] + hc[:, Hp:]                             # (Np, Hp)

    # ---- sequence_cls: Linear -> LayerNorm(channels_last) -> ReLU -> Linear(H,1) ----
    z = jnp.dot(h, w1_ref[...], preferred_element_type=jnp.float32) + b1_ref[...]
    mean = jnp.mean(z, axis=-1, keepdims=True)
    var = jnp.mean(jnp.square(z - mean), axis=-1, keepdims=True)
    zn = (z - mean) * lax.rsqrt(var + 1e-5)
    zn = zn * gamma_ref[...] + beta_ref[...]
    a = jnp.maximum(zn, 0.0)
    # Linear(H, 1) as VPU multiply + lane reduction (avoids a 1-column MXU matmul).
    out_ref[...] = jnp.sum(a * w2_ref[...], axis=-1, keepdims=True) + b2o_ref[...]


def _fuse_bidir_weights(params, D, H, Hp):
    """Pack both LSTM directions into block-structured fused matrices with H padded to Hp.

    Gate order is [i, f, o, g] (reordered from PyTorch's i,f,g,o so one sigmoid covers the
    first 3 slabs). Each gate slab is [fwd(Hp) | rev(Hp)] = 2*Hp lanes, i.e. exactly one
    vreg width when Hp == 64.
      wih2 rows 0:D  multiply x[t]      and feed only forward-direction columns.
      wih2 rows D:2D multiply x[L-1-t]  and feed only reverse-direction columns.
      whh2 rows 0:Hp multiply h_fwd; rows Hp:2Hp multiply h_rev (block diagonal per gate).
    Padded rows/columns are zero, so padded state stays exactly zero through the recurrence.
    """
    order = (0, 1, 3, 2)  # [i, f, o, g] in PyTorch's (i, f, g, o) storage order
    wih2 = jnp.zeros((2 * D, 8 * Hp), jnp.float32)
    whh2 = jnp.zeros((2 * Hp, 8 * Hp), jnp.float32)
    bg = jnp.zeros((1, 8 * Hp), jnp.float32)
    for pos, k in enumerate(order):
        src = slice(k * H, (k + 1) * H)
        fwd = slice(pos * 2 * Hp, pos * 2 * Hp + H)
        rev = slice(pos * 2 * Hp + Hp, pos * 2 * Hp + Hp + H)
        wih2 = wih2.at[:D, fwd].set(params["wih_f"][:, src])
        wih2 = wih2.at[D:, rev].set(params["wih_r"][:, src])
        whh2 = whh2.at[:H, fwd].set(params["whh_f"][:, src])
        whh2 = whh2.at[Hp:Hp + H, rev].set(params["whh_r"][:, src])
        bg = bg.at[:, fwd].set(params["b_f"][:, src])
        bg = bg.at[:, rev].set(params["b_r"][:, src])
    return wih2, whh2, bg


def trajectory_discriminator(x, params):
    """x: (N, L, D) batch-first float32, returns (N, 1) float32."""
    N, L, D = x.shape
    H = params["whh_f"].shape[0]
    Np = max(8, ((N + 7) // 8) * 8)     # sublane-aligned batch rows per time step
    Hp = max(64, ((H + 63) // 64) * 64)  # each [fwd|rev] gate slab = 2*Hp = vreg multiple

    # Layout plumbing (no compute): pad batch, go time-major, concatenate the time-flipped
    # copy feature-wise so one block-structured matmul projects both directions at once.
    x_p = jnp.zeros((Np, L, D), jnp.float32).at[:N].set(x)
    x_tm = jnp.transpose(x_p, (1, 0, 2))                                # (L, Np, D)
    x_bi = jnp.concatenate([x_tm, jnp.flip(x_tm, axis=0)], axis=-1)     # (L, Np, 2D)
    x2 = x_bi.reshape(L * Np, 2 * D)                                    # (L*Np, 2D)

    wih2, whh2, bg = _fuse_bidir_weights(params, D, H, Hp)
    w1p = jnp.zeros((Hp, H), jnp.float32).at[:H].set(params["w1"])      # padded rows = 0
    w2t = jnp.transpose(params["w2"])                                   # (1, H)

    args = (x2, wih2, whh2, bg,
            w1p, params["b1"],
            params["gamma"], params["beta"],
            w2t, params["b2"])

    out_p = pl.pallas_call(
        trajectory_discriminator_kernel,
        out_shape=jax.ShapeDtypeStruct((Np, 1), jnp.float32),
        in_specs=[pl.BlockSpec(memory_space=pltpu.MemorySpace.VMEM)] * len(args),
        out_specs=pl.BlockSpec(memory_space=pltpu.MemorySpace.VMEM),
    )(*args)
    return out_p[:N]


def reference_forward(x, params, recurrent_dtype=jnp.float32):
    """Pure-JAX reference of the module forward.

    recurrent_dtype=jnp.bfloat16 reproduces the kernel's bf16 recurrent-matmul operands
    (f32 accumulation) for a tight numerical comparison; jnp.float32 is the exact module.
    """
    N, L, D = x.shape
    H = params["whh_f"].shape[0]

    def cell(x_t, h, c, wih, whh, b):
        gates = (x_t @ wih
                 + jnp.dot(h.astype(recurrent_dtype), whh.astype(recurrent_dtype),
                           preferred_element_type=jnp.float32)
                 + b)
        i = jax.nn.sigmoid(gates[:, :H])
        f = jax.nn.sigmoid(gates[:, H:2 * H])
        g = jnp.tanh(gates[:, 2 * H:3 * H])
        o = jax.nn.sigmoid(gates[:, 3 * H:])
        c = f * c + i * g
        h = o * jnp.tanh(c)
        return h, c

    hf = jnp.zeros((N, H), jnp.float32)
    cf = jnp.zeros((N, H), jnp.float32)
    hr = jnp.zeros((N, H), jnp.float32)
    cr = jnp.zeros((N, H), jnp.float32)
    for t in range(L):
        hf, cf = cell(x[:, t], hf, cf, params["wih_f"], params["whh_f"], params["b_f"])
        hr, cr = cell(x[:, L - 1 - t], hr, cr, params["wih_r"], params["whh_r"], params["b_r"])
    h = hf + hr
    z = h @ params["w1"] + params["b1"]
    mean = z.mean(-1, keepdims=True)
    var = ((z - mean) ** 2).mean(-1, keepdims=True)
    zn = (z - mean) / jnp.sqrt(var + 1e-5) * params["gamma"] + params["beta"]
    a = jnp.maximum(zn, 0.0)
    return a @ params["w2"] + params["b2"]


def make_params(key, input_dim, latent_dim):
    D, H = input_dim, latent_dim
    s = float(1.0 / (H ** 0.5))
    ks = jax.random.split(key, 12)
    u = lambda k, shape: jax.random.uniform(k, shape, minval=-s, maxval=s,
                                            dtype=jnp.float32)
    return {
        # LSTM forward direction (PyTorch: weight_ih_l0, weight_hh_l0, bias_ih+bias_hh summed)
        "wih_f": u(ks[0], (D, 4 * H)),
        "whh_f": u(ks[1], (H, 4 * H)),
        "b_f": u(ks[2], (1, 4 * H)),
        # LSTM reverse direction
        "wih_r": u(ks[3], (D, 4 * H)),
        "whh_r": u(ks[4], (H, 4 * H)),
        "b_r": u(ks[5], (1, 4 * H)),
        # sequence_cls: Linear(H, H)
        "w1": u(ks[6], (H, H)),
        "b1": u(ks[7], (1, H)),
        # LayerNorm(H) default PyTorch init
        "gamma": jnp.ones((1, H), jnp.float32),
        "beta": jnp.zeros((1, H), jnp.float32),
        # sequence_cls: Linear(H, 1)
        "w2": u(ks[8], (H, 1)),
        "b2": u(ks[9], (1, 1)),
    }


if __name__ == "__main__":
    N, L, D, H = 2, 8, 4, 32  # batch, seq len, input_dim, latent_dim
    key = jax.random.PRNGKey(0)
    kx, kp = jax.random.split(key)
    x = jax.random.normal(kx, (N, L, D), dtype=jnp.float32)
    params = make_params(kp, D, H)

    out = trajectory_discriminator(x, params)
    out = jax.block_until_ready(out)
    assert out.shape == (N, 1), out.shape

    # Tight check vs. a reference using the same bf16 recurrent-matmul operands as the kernel.
    ref_bf16 = reference_forward(x, params, recurrent_dtype=jnp.bfloat16)
    assert jnp.allclose(out, ref_bf16, rtol=2e-3, atol=2e-3), (out, ref_bf16)
    # Loose sanity bound vs. the exact f32 module semantics (bf16 drift compounds over L steps).
    ref_f32 = reference_forward(x, params)
    assert jnp.allclose(out, ref_f32, rtol=1e-1, atol=1e-1), (out, ref_f32)

    print("KERNEL_OK")
</pallas_src>

<mosaic_0001>
module attributes {stable_mosaic.version = 11 : i64} {
  func.func @trajectory_discriminator_kernel(%arg0: memref<64x8xf32, #tpu.memory_space<vmem>>, %arg1: memref<8x512xf32, #tpu.memory_space<vmem>>, %arg2: memref<128x512xf32, #tpu.memory_space<vmem>>, %arg3: memref<1x512xf32, #tpu.memory_space<vmem>>, %arg4: memref<64x32xf32, #tpu.memory_space<vmem>>, %arg5: memref<1x32xf32, #tpu.memory_space<vmem>>, %arg6: memref<1x32xf32, #tpu.memory_space<vmem>>, %arg7: memref<1x32xf32, #tpu.memory_space<vmem>>, %arg8: memref<1x32xf32, #tpu.memory_space<vmem>>, %arg9: memref<1x1xf32, #tpu.memory_space<vmem>>, %arg10: memref<8x1xf32, #tpu.memory_space<vmem>>) attributes {dimension_semantics = [], scalar_prefetch = 0 : i64, scratch_operands = 0 : i64, tpu.core_type = #tpu.core_type<tc>} {
    %c0 = arith.constant 0 : index
    %c0_0 = arith.constant 0 : index
    %0 = vector.load %arg0[%c0, %c0_0] : memref<64x8xf32, #tpu.memory_space<vmem>>, vector<64x8xf32>
    %c0_1 = arith.constant 0 : index
    %c0_2 = arith.constant 0 : index
    %1 = vector.load %arg1[%c0_1, %c0_2] : memref<8x512xf32, #tpu.memory_space<vmem>>, vector<8x512xf32>
    %cst = arith.constant dense<0.000000e+00> : vector<64x512xf32>
    %2 = tpu.matmul %0, %1, %cst {dimension_numbers = #tpu.dot_dimension_numbers<[1], [0], [0], [1], [0, 0, 1, 1], [], []>} : vector<64x8xf32>, vector<8x512xf32>, vector<64x512xf32> -> vector<64x512xf32>
    %c0_3 = arith.constant 0 : index
    %c0_4 = arith.constant 0 : index
    %3 = vector.load %arg3[%c0_3, %c0_4] : memref<1x512xf32, #tpu.memory_space<vmem>>, vector<1x512xf32>
    %4 = vector.broadcast %3 : vector<1x512xf32> to vector<64x512xf32>
    %5 = arith.addf %2, %4 : vector<64x512xf32>
    %c0_5 = arith.constant 0 : index
    %c0_6 = arith.constant 0 : index
    %6 = vector.load %arg2[%c0_5, %c0_6] : memref<128x512xf32, #tpu.memory_space<vmem>>, vector<128x512xf32>
    %7 = arith.truncf %6 : vector<128x512xf32> to vector<128x512xbf16>
    %8 = vector.extract_strided_slice %5 {offsets = [0, 0], sizes = [8, 512], strides = [1, 1]} : vector<64x512xf32> to vector<8x512xf32>
    %9 = vector.extract_strided_slice %8 {offsets = [0, 0], sizes = [8, 384], strides = [1, 1]} : vector<8x512xf32> to vector<8x384xf32>
    %10 = arith.negf %9 : vector<8x384xf32>
    %11 = math.exp %10 : vector<8x384xf32>
    %cst_7 = arith.constant 1.000000e+00 : f32
    %12 = vector.broadcast %cst_7 : f32 to vector<8x384xf32>
    %13 = arith.addf %12, %11 : vector<8x384xf32>
    %14 = arith.divf %12, %13 : vector<8x384xf32>
    %15 = vector.extract_strided_slice %8 {offsets = [0, 384], sizes = [8, 128], strides = [1, 1]} : vector<8x512xf32> to vector<8x128xf32>
    %16 = math.tanh %15 : vector<8x128xf32>
    %17 = vector.extract_strided_slice %14 {offsets = [0, 0], sizes = [8, 128], strides = [1, 1]} : vector<8x384xf32> to vector<8x128xf32>
    %18 = arith.mulf %17, %16 : vector<8x128xf32>
    %19 = vector.extract_strided_slice %14 {offsets = [0, 256], sizes = [8, 128], strides = [1, 1]} : vector<8x384xf32> to vector<8x128xf32>
    %20 = math.tanh %18 : vector<8x128xf32>
    %21 = arith.mulf %19, %20 : vector<8x128xf32>
    %22 = vector.extract_strided_slice %5 {offsets = [8, 0], sizes = [8, 512], strides = [1, 1]} : vector<64x512xf32> to vector<8x512xf32>
    %23 = arith.truncf %21 : vector<8x128xf32> to vector<8x128xbf16>
    %cst_8 = arith.constant dense<0.000000e+00> : vector<8x512xf32>
    %24 = tpu.matmul %23, %7, %cst_8 {dimension_numbers = #tpu.dot_dimension_numbers<[1], [0], [0], [1], [0, 0, 1, 1], [], []>} : vector<8x128xbf16>, vector<128x512xbf16>, vector<8x512xf32> -> vector<8x512xf32>
    %25 = arith.addf %22, %24 : vector<8x512xf32>
    %26 = vector.extract_strided_slice %25 {offsets = [0, 0], sizes = [8, 384], strides = [1, 1]} : vector<8x512xf32> to vector<8x384xf32>
    %27 = arith.negf %26 : vector<8x384xf32>
    %28 = math.exp %27 : vector<8x384xf32>
    %cst_9 = arith.constant 1.000000e+00 : f32
    %29 = vector.broadcast %cst_9 : f32 to vector<8x384xf32>
    %30 = arith.addf %29, %28 : vector<8x384xf32>
    %31 = arith.divf %29, %30 : vector<8x384xf32>
    %32 = vector.extract_strided_slice %25 {offsets = [0, 384], sizes = [8, 128], strides = [1, 1]} : vector<8x512xf32> to vector<8x128xf32>
    %33 = math.tanh %32 : vector<8x128xf32>
    %34 = vector.extract_strided_slice %31 {offsets = [0, 0], sizes = [8, 128], strides = [1, 1]} : vector<8x384xf32> to vector<8x128xf32>
    %35 = vector.extract_strided_slice %31 {offsets = [0, 128], sizes = [8, 128], strides = [1, 1]} : vector<8x384xf32> to vector<8x128xf32>
    %36 = vector.extract_strided_slice %31 {offsets = [0, 256], sizes = [8, 128], strides = [1, 1]} : vector<8x384xf32> to vector<8x128xf32>
    %37 = arith.mulf %35, %18 : vector<8x128xf32>
    %38 = arith.mulf %34, %33 : vector<8x128xf32>
    %39 = arith.addf %37, %38 : vector<8x128xf32>
    %40 = math.tanh %39 : vector<8x128xf32>
    %41 = arith.mulf %36, %40 : vector<8x128xf32>
    %42 = vector.extract_strided_slice %5 {offsets = [16, 0], sizes = [8, 512], strides = [1, 1]} : vector<64x512xf32> to vector<8x512xf32>
    %43 = arith.truncf %41 : vector<8x128xf32> to vector<8x128xbf16>
    %cst_10 = arith.constant dense<0.000000e+00> : vector<8x512xf32>
    %44 = tpu.matmul %43, %7, %cst_10 {dimension_numbers = #tpu.dot_dimension_numbers<[1], [0], [0], [1], [0, 0, 1, 1], [], []>} : vector<8x128xbf16>, vector<128x512xbf16>, vector<8x512xf32> -> vector<8x512xf32>
    %45 = arith.addf %42, %44 : vector<8x512xf32>
    %46 = vector.extract_strided_slice %45 {offsets = [0, 0], sizes = [8, 384], strides = [1, 1]} : vector<8x512xf32> to vector<8x384xf32>
    %47 = arith.negf %46 : vector<8x384xf32>
    %48 = math.exp %47 : vector<8x384xf32>
    %cst_11 = arith.constant 1.000000e+00 : f32
    %49 = vector.broadcast %cst_11 : f32 to vector<8x384xf32>
    %50 = arith.addf %49, %48 : vector<8x384xf32>
    %51 = arith.divf %49, %50 : vector<8x384xf32>
    %52 = vector.extract_strided_slice %45 {offsets = [0, 384], sizes = [8, 128], strides = [1, 1]} : vector<8x512xf32> to vector<8x128xf32>
    %53 = math.tanh %52 : vector<8x128xf32>
    %54 = vector.extract_strided_slice %51 {offsets = [0, 0], sizes = [8, 128], strides = [1, 1]} : vector<8x384xf32> to vector<8x128xf32>
    %55 = vector.extract_strided_slice %51 {offsets = [0, 128], sizes = [8, 128], strides = [1, 1]} : vector<8x384xf32> to vector<8x128xf32>
    %56 = vector.extract_strided_slice %51 {offsets = [0, 256], sizes = [8, 128], strides = [1, 1]} : vector<8x384xf32> to vector<8x128xf32>
    %57 = arith.mulf %55, %39 : vector<8x128xf32>
    %58 = arith.mulf %54, %53 : vector<8x128xf32>
    %59 = arith.addf %57, %58 : vector<8x128xf32>
    %60 = math.tanh %59 : vector<8x128xf32>
    %61 = arith.mulf %56, %60 : vector<8x128xf32>
    %62 = vector.extract_strided_slice %5 {offsets = [24, 0], sizes = [8, 512], strides = [1, 1]} : vector<64x512xf32> to vector<8x512xf32>
    %63 = arith.truncf %61 : vector<8x128xf32> to vector<8x128xbf16>
    %cst_12 = arith.constant dense<0.000000e+00> : vector<8x512xf32>
    %64 = tpu.matmul %63, %7, %cst_12 {dimension_numbers = #tpu.dot_dimension_numbers<[1], [0], [0], [1], [0, 0, 1, 1], [], []>} : vector<8x128xbf16>, vector<128x512xbf16>, vector<8x512xf32> -> vector<8x512xf32>
    %65 = arith.addf %62, %64 : vector<8x512xf32>
    %66 = vector.extract_strided_slice %65 {offsets = [0, 0], sizes = [8, 384], strides = [1, 1]} : vector<8x512xf32> to vector<8x384xf32>
    %67 = arith.negf %66 : vector<8x384xf32>
    %68 = math.exp %67 : vector<8x384xf32>
    %cst_13 = arith.constant 1.000000e+00 : f32
    %69 = vector.broadcast %cst_13 : f32 to vector<8x384xf32>
    %70 = arith.addf %69, %68 : vector<8x384xf32>
    %71 = arith.divf %69, %70 : vector<8x384xf32>
    %72 = vector.extract_strided_slice %65 {offsets = [0, 384], sizes = [8, 128], strides = [1, 1]} : vector<8x512xf32> to vector<8x128xf32>
    %73 = math.tanh %72 : vector<8x128xf32>
    %74 = vector.extract_strided_slice %71 {offsets = [0, 0], sizes = [8, 128], strides = [1, 1]} : vector<8x384xf32> to vector<8x128xf32>
    %75 = vector.extract_strided_slice %71 {offsets = [0, 128], sizes = [8, 128], strides = [1, 1]} : vector<8x384xf32> to vector<8x128xf32>
    %76 = vector.extract_strided_slice %71 {offsets = [0, 256], sizes = [8, 128], strides = [1, 1]} : vector<8x384xf32> to vector<8x128xf32>
    %77 = arith.mulf %75, %59 : vector<8x128xf32>
    %78 = arith.mulf %74, %73 : vector<8x128xf32>
    %79 = arith.addf %77, %78 : vector<8x128xf32>
    %80 = math.tanh %79 : vector<8x128xf32>
    %81 = arith.mulf %76, %80 : vector<8x128xf32>
    %82 = vector.extract_strided_slice %5 {offsets = [32, 0], sizes = [8, 512], strides = [1, 1]} : vector<64x512xf32> to vector<8x512xf32>
    %83 = arith.truncf %81 : vector<8x128xf32> to vector<8x128xbf16>
    %cst_14 = arith.constant dense<0.000000e+00> : vector<8x512xf32>
    %84 = tpu.matmul %83, %7, %cst_14 {dimension_numbers = #tpu.dot_dimension_numbers<[1], [0], [0], [1], [0, 0, 1, 1], [], []>} : vector<8x128xbf16>, vector<128x512xbf16>, vector<8x512xf32> -> vector<8x512xf32>
    %85 = arith.addf %82, %84 : vector<8x512xf32>
    %86 = vector.extract_strided_slice %85 {offsets = [0, 0], sizes = [8, 384], strides = [1, 1]} : vector<8x512xf32> to vector<8x384xf32>
    %87 = arith.negf %86 : vector<8x384xf32>
    %88 = math.exp %87 : vector<8x384xf32>
    %cst_15 = arith.constant 1.000000e+00 : f32
    %89 = vector.broadcast %cst_15 : f32 to vector<8x384xf32>
    %90 = arith.addf %89, %88 : vector<8x384xf32>
    %91 = arith.divf %89, %90 : vector<8x384xf32>
    %92 = vector.extract_strided_slice %85 {offsets = [0, 384], sizes = [8, 128], strides = [1, 1]} : vector<8x512xf32> to vector<8x128xf32>
    %93 = math.tanh %92 : vector<8x128xf32>
    %94 = vector.extract_strided_slice %91 {offsets = [0, 0], sizes = [8, 128], strides = [1, 1]} : vector<8x384xf32> to vector<8x128xf32>
    %95 = vector.extract_strided_slice %91 {offsets = [0, 128], sizes = [8, 128], strides = [1, 1]} : vector<8x384xf32> to vector<8x128xf32>
    %96 = vector.extract_strided_slice %91 {offsets = [0, 256], sizes = [8, 128], strides = [1, 1]} : vector<8x384xf32> to vector<8x128xf32>
    %97 = arith.mulf %95, %79 : vector<8x128xf32>
    %98 = arith.mulf %94, %93 : vector<8x128xf32>
    %99 = arith.addf %97, %98 : vector<8x128xf32>
    %100 = math.tanh %99 : vector<8x128xf32>
    %101 = arith.mulf %96, %100 : vector<8x128xf32>
    %102 = vector.extract_strided_slice %5 {offsets = [40, 0], sizes = [8, 512], strides = [1, 1]} : vector<64x512xf32> to vector<8x512xf32>
    %103 = arith.truncf %101 : vector<8x128xf32> to vector<8x128xbf16>
    %cst_16 = arith.constant dense<0.000000e+00> : vector<8x512xf32>
    %104 = tpu.matmul %103, %7, %cst_16 {dimension_numbers = #tpu.dot_dimension_numbers<[1], [0], [0], [1], [0, 0, 1, 1], [], []>} : vector<8x128xbf16>, vector<128x512xbf16>, vector<8x512xf32> -> vector<8x512xf32>
    %105 = arith.addf %102, %104 : vector<8x512xf32>
    %106 = vector.extract_strided_slice %105 {offsets = [0, 0], sizes = [8, 384], strides = [1, 1]} : vector<8x512xf32> to vector<8x384xf32>
    %107 = arith.negf %106 : vector<8x384xf32>
    %108 = math.exp %107 : vector<8x384xf32>
    %cst_17 = arith.constant 1.000000e+00 : f32
    %109 = vector.broadcast %cst_17 : f32 to vector<8x384xf32>
    %110 = arith.addf %109, %108 : vector<8x384xf32>
    %111 = arith.divf %109, %110 : vector<8x384xf32>
    %112 = vector.extract_strided_slice %105 {offsets = [0, 384], sizes = [8, 128], strides = [1, 1]} : vector<8x512xf32> to vector<8x128xf32>
    %113 = math.tanh %112 : vector<8x128xf32>
    %114 = vector.extract_strided_slice %111 {offsets = [0, 0], sizes = [8, 128], strides = [1, 1]} : vector<8x384xf32> to vector<8x128xf32>
    %115 = vector.extract_strided_slice %111 {offsets = [0, 128], sizes = [8, 128], strides = [1, 1]} : vector<8x384xf32> to vector<8x128xf32>
    %116 = vector.extract_strided_slice %111 {offsets = [0, 256], sizes = [8, 128], strides = [1, 1]} : vector<8x384xf32> to vector<8x128xf32>
    %117 = arith.mulf %115, %99 : vector<8x128xf32>
    %118 = arith.mulf %114, %113 : vector<8x128xf32>
    %119 = arith.addf %117, %118 : vector<8x128xf32>
    %120 = math.tanh %119 : vector<8x128xf32>
    %121 = arith.mulf %116, %120 : vector<8x128xf32>
    %122 = vector.extract_strided_slice %5 {offsets = [48, 0], sizes = [8, 512], strides = [1, 1]} : vector<64x512xf32> to vector<8x512xf32>
    %123 = arith.truncf %121 : vector<8x128xf32> to vector<8x128xbf16>
    %cst_18 = arith.constant dense<0.000000e+00> : vector<8x512xf32>
    %124 = tpu.matmul %123, %7, %cst_18 {dimension_numbers = #tpu.dot_dimension_numbers<[1], [0], [0], [1], [0, 0, 1, 1], [], []>} : vector<8x128xbf16>, vector<128x512xbf16>, vector<8x512xf32> -> vector<8x512xf32>
    %125 = arith.addf %122, %124 : vector<8x512xf32>
    %126 = vector.extract_strided_slice %125 {offsets = [0, 0], sizes = [8, 384], strides = [1, 1]} : vector<8x512xf32> to vector<8x384xf32>
    %127 = arith.negf %126 : vector<8x384xf32>
    %128 = math.exp %127 : vector<8x384xf32>
    %cst_19 = arith.constant 1.000000e+00 : f32
    %129 = vector.broadcast %cst_19 : f32 to vector<8x384xf32>
    %130 = arith.addf %129, %128 : vector<8x384xf32>
    %131 = arith.divf %129, %130 : vector<8x384xf32>
    %132 = vector.extract_strided_slice %125 {offsets = [0, 384], sizes = [8, 128], strides = [1, 1]} : vector<8x512xf32> to vector<8x128xf32>
    %133 = math.tanh %132 : vector<8x128xf32>
    %134 = vector.extract_strided_slice %131 {offsets = [0, 0], sizes = [8, 128], strides = [1, 1]} : vector<8x384xf32> to vector<8x128xf32>
    %135 = vector.extract_strided_slice %131 {offsets = [0, 128], sizes = [8, 128], strides = [1, 1]} : vector<8x384xf32> to vector<8x128xf32>
    %136 = vector.extract_strided_slice %131 {offsets = [0, 256], sizes = [8, 128], strides = [1, 1]} : vector<8x384xf32> to vector<8x128xf32>
    %137 = arith.mulf %135, %119 : vector<8x128xf32>
    %138 = arith.mulf %134, %133 : vector<8x128xf32>
    %139 = arith.addf %137, %138 : vector<8x128xf32>
    %140 = math.tanh %139 : vector<8x128xf32>
    %141 = arith.mulf %136, %140 : vector<8x128xf32>
    %142 = vector.extract_strided_slice %5 {offsets = [56, 0], sizes = [8, 512], strides = [1, 1]} : vector<64x512xf32> to vector<8x512xf32>
    %143 = arith.truncf %141 : vector<8x128xf32> to vector<8x128xbf16>
    %cst_20 = arith.constant dense<0.000000e+00> : vector<8x512xf32>
    %144 = tpu.matmul %143, %7, %cst_20 {dimension_numbers = #tpu.dot_dimension_numbers<[1], [0], [0], [1], [0, 0, 1, 1], [], []>} : vector<8x128xbf16>, vector<128x512xbf16>, vector<8x512xf32> -> vector<8x512xf32>
    %145 = arith.addf %142, %144 : vector<8x512xf32>
    %146 = vector.extract_strided_slice %145 {offsets = [0, 0], sizes = [8, 384], strides = [1, 1]} : vector<8x512xf32> to vector<8x384xf32>
    %147 = arith.negf %146 : vector<8x384xf32>
    %148 = math.exp %147 : vector<8x384xf32>
    %cst_21 = arith.constant 1.000000e+00 : f32
    %149 = vector.broadcast %cst_21 : f32 to vector<8x384xf32>
    %150 = arith.addf %149, %148 : vector<8x384xf32>
    %151 = arith.divf %149, %150 : vector<8x384xf32>
    %152 = vector.extract_strided_slice %145 {offsets = [0, 384], sizes = [8, 128], strides = [1, 1]} : vector<8x512xf32> to vector<8x128xf32>
    %153 = math.tanh %152 : vector<8x128xf32>
    %154 = vector.extract_strided_slice %151 {offsets = [0, 0], sizes = [8, 128], strides = [1, 1]} : vector<8x384xf32> to vector<8x128xf32>
    %155 = vector.extract_strided_slice %151 {offsets = [0, 128], sizes = [8, 128], strides = [1, 1]} : vector<8x384xf32> to vector<8x128xf32>
    %156 = vector.extract_strided_slice %151 {offsets = [0, 256], sizes = [8, 128], strides = [1, 1]} : vector<8x384xf32> to vector<8x128xf32>
    %157 = arith.mulf %155, %139 : vector<8x128xf32>
    %158 = arith.mulf %154, %153 : vector<8x128xf32>
    %159 = arith.addf %157, %158 : vector<8x128xf32>
    %160 = math.tanh %159 : vector<8x128xf32>
    %161 = arith.mulf %156, %160 : vector<8x128xf32>
    %162 = vector.extract_strided_slice %161 {offsets = [0, 0], sizes = [8, 64], strides = [1, 1]} : vector<8x128xf32> to vector<8x64xf32>
    %163 = vector.extract_strided_slice %161 {offsets = [0, 64], sizes = [8, 64], strides = [1, 1]} : vector<8x128xf32> to vector<8x64xf32>
    %164 = arith.addf %162, %163 : vector<8x64xf32>
    %c0_22 = arith.constant 0 : index
    %c0_23 = arith.constant 0 : index
    %165 = vector.load %arg4[%c0_22, %c0_23] : memref<64x32xf32, #tpu.memory_space<vmem>>, vector<64x32xf32>
    %cst_24 = arith.constant dense<0.000000e+00> : vector<8x32xf32>
    %166 = tpu.matmul %164, %165, %cst_24 {dimension_numbers = #tpu.dot_dimension_numbers<[1], [0], [0], [1], [0, 0, 1, 1], [], []>} : vector<8x64xf32>, vector<64x32xf32>, vector<8x32xf32> -> vector<8x32xf32>
    %c0_25 = arith.constant 0 : index
    %c0_26 = arith.constant 0 : index
    %167 = vector.load %arg5[%c0_25, %c0_26] : memref<1x32xf32, #tpu.memory_space<vmem>>, vector<1x32xf32>
    %168 = vector.broadcast %167 : vector<1x32xf32> to vector<8x32xf32>
    %169 = arith.addf %166, %168 : vector<8x32xf32>
    %cst_27 = arith.constant dense<0.000000e+00> : vector<8xf32>
    %170 = vector.multi_reduction <add>, %169, %cst_27 [1] : vector<8x32xf32> to vector<8xf32>
    %171 = vector.shape_cast %170 : vector<8xf32> to vector<8x1xf32>
    %cst_28 = arith.constant 3.200000e+01 : f32
    %172 = vector.broadcast %cst_28 : f32 to vector<8x1xf32>
    %173 = arith.divf %171, %172 : vector<8x1xf32>
    %174 = vector.broadcast %173 : vector<8x1xf32> to vector<8x32xf32>
    %175 = arith.subf %169, %174 : vector<8x32xf32>
    %176 = arith.mulf %175, %175 : vector<8x32xf32>
    %cst_29 = arith.constant dense<0.000000e+00> : vector<8xf32>
    %177 = vector.multi_reduction <add>, %176, %cst_29 [1] : vector<8x32xf32> to vector<8xf32>
    %178 = vector.shape_cast %177 : vector<8xf32> to vector<8x1xf32>
    %cst_30 = arith.constant 3.200000e+01 : f32
    %179 = vector.broadcast %cst_30 : f32 to vector<8x1xf32>
    %180 = arith.divf %178, %179 : vector<8x1xf32>
    %181 = vector.broadcast %173 : vector<8x1xf32> to vector<8x32xf32>
    %182 = arith.subf %169, %181 : vector<8x32xf32>
    %cst_31 = arith.constant 9.99999974E-6 : f32
    %183 = vector.broadcast %cst_31 : f32 to vector<8x1xf32>
    %184 = arith.addf %180, %183 : vector<8x1xf32>
    %185 = math.rsqrt %184 : vector<8x1xf32>
    %186 = vector.broadcast %185 : vector<8x1xf32> to vector<8x32xf32>
    %187 = arith.mulf %182, %186 : vector<8x32xf32>
    %c0_32 = arith.constant 0 : index
    %c0_33 = arith.constant 0 : index
    %188 = vector.load %arg6[%c0_32, %c0_33] : memref<1x32xf32, #tpu.memory_space<vmem>>, vector<1x32xf32>
    %189 = vector.broadcast %188 : vector<1x32xf32> to vector<8x32xf32>
    %190 = arith.mulf %187, %189 : vector<8x32xf32>
    %c0_34 = arith.constant 0 : index
    %c0_35 = arith.constant 0 : index
    %191 = vector.load %arg7[%c0_34, %c0_35] : memref<1x32xf32, #tpu.memory_space<vmem>>, vector<1x32xf32>
    %192 = vector.broadcast %191 : vector<1x32xf32> to vector<8x32xf32>
    %193 = arith.addf %190, %192 : vector<8x32xf32>
    %cst_36 = arith.constant 0.000000e+00 : f32
    %194 = vector.broadcast %cst_36 : f32 to vector<8x32xf32>
    %195 = arith.maximumf %193, %194 : vector<8x32xf32>
    %c0_37 = arith.constant 0 : index
    %c0_38 = arith.constant 0 : index
    %196 = vector.load %arg8[%c0_37, %c0_38] : memref<1x32xf32, #tpu.memory_space<vmem>>, vector<1x32xf32>
    %197 = vector.broadcast %196 : vector<1x32xf32> to vector<8x32xf32>
    %198 = arith.mulf %195, %197 : vector<8x32xf32>
    %cst_39 = arith.constant dense<0.000000e+00> : vector<8xf32>
    %199 = vector.multi_reduction <add>, %198, %cst_39 [1] : vector<8x32xf32> to vector<8xf32>
    %200 = vector.shape_cast %199 : vector<8xf32> to vector<8x1xf32>
    %c0_40 = arith.constant 0 : index
    %c0_41 = arith.constant 0 : index
    %201 = vector.load %arg9[%c0_40, %c0_41] : memref<1x1xf32, #tpu.memory_space<vmem>>, vector<1x1xf32>
    %202 = vector.broadcast %201 : vector<1x1xf32> to vector<8x1xf32>
    %203 = arith.addf %200, %202 : vector<8x1xf32>
    %c0_42 = arith.constant 0 : index
    %c0_43 = arith.constant 0 : index
    %204 = vector.load %arg10[%c0_42, %c0_43] : memref<8x1xf32, #tpu.memory_space<vmem>>, vector<8x1xf32>
    tpu.vector_store %arg10[%c0_42, %c0_43], %203 {strides = array<i32>} : memref<8x1xf32, #tpu.memory_space<vmem>>, vector<8x1xf32>,
    return
  }
}

</mosaic_0001>

<bundles_post_ra>
// kernel: tpu_custom_call.1
= control target key start
LH: loop header
LB: loop body
LE: loop exit
PB: predicated region body
PF: predicated region fallthrough
CT: control target
= control target key end

     0   :  { %s2256_s0 = inlined_call_operand.vmem [shape: f32[64,8], index: 0, kind: input, shape index: {}]   ;;  %s2257_s1 = inlined_call_operand.vmem [shape: f32[8,512], index: 1, kind: input, shape index: {}]   ;;  %s2258_s2 = inlined_call_operand.hbm [shape: f32[128,512], index: 2, kind: input, shape index: {}]   ;;  %s2259_s3 = inlined_call_operand.vmem [shape: f32[1,512], index: 3, kind: input, shape index: {}]   ;;  %s2260_s4 = inlined_call_operand.vmem [shape: f32[64,32], index: 4, kind: input, shape index: {}]   ;;  %s2261_s5 = inlined_call_operand.vmem [shape: f32[1,32], index: 5, kind: input, shape index: {}]   ;;  %s2262_s6 = inlined_call_operand.vmem [shape: f32[1,32], index: 6, kind: input, shape index: {}]   ;;  %s2263_s7 = inlined_call_operand.vmem [shape: f32[1,32], index: 7, kind: input, shape index: {}]   ;;  %s2264_s8 = inlined_call_operand.vmem [shape: f32[1,32], index: 8, kind: input, shape index: {}]   ;;  %s2265_s9 = inlined_call_operand.<no memory space> [shape: f32[1,1], index: 9, kind: input, shape index: {}]   ;;  %s2266_s10 = inlined_call_operand.vmem [shape: f32[8,1], index: 10, kind: output, shape index: {}]  }
   0x1   :  { %v15_v0 = vstv %s2265_s9 }
   0x2   :  { %16 = vst [vmem:[#allocation2] sm:$0x1] %v15_v0 }
   0x3   :  { %17 = vsyncpa [#allocation4], 0  ;;  %s1620_s15 = smov [#allocation3]   ;;  %s1596_s19 = scalar_lea.hbm %s2258_s2, 8192 }
   0x4   :  { %s27_s16 = sshll.u32 %s1620_s15, 4  ;;  %p1597_p0 = scmp.ne.s32.totalorder %s2258_s2, %s1596_s19  ;;  %s28_s16 = int_to_ptr.vmem [resolvable:$true] %s27_s16 }
   0x5   :  { %p1600_p1 = scmp.lt.u32.totalorder %s1596_s19, %s2258_s2 }
   0x7   :  { %p1602_p2 = pnand %p1600_p1, %p1597_p0 }
   0x9   :  { %1605 = shalt.err (!%p1602_p2)
}
   0xa   :  { %s1606_s9 = scalar_lea.vmem %s28_s16, 8192  ;;  %p1611_p4 = scmp.lt.s32.totalorder %s28_s16, %s28_s16 }
   0xb   :  { %p1607_p3 = scmp.ne.s32.totalorder %s28_s16, %s1606_s9  ;;  %p1612_p5 = scmp.lt.s32.totalorder %s1606_s9, %s1606_s9 }
   0xd   :  { %p1613_p6 = por %p1612_p5, %p1611_p4 }
   0xf   :  { %p1614_p7 = pnand %p1613_p6, %p1607_p3 }
  0x11   :  { %1617 = shalt.err (!%p1614_p7)
}
  0x12   :  { %s1621_s24 = smov 512   ;;  %s1622_s25 = smov 32  }
  0x13   :  { %33 = dma.hbm_to_vmem [thread:$0]  %s2258_s2, 8192, %s28_s16, [#allocation4], %s1621_s24, %s1621_s24, %s1622_s25  }
  0x14   :  { %1618 = dma.done.wait [#allocation4], 8192  }
  0x15   :  { %1619 = vsyncadd [#allocation4], 4294959104  ;;  %v2267_v1 = vmov 0.0   ;;  %v61_v2 = vld [vmem:[%s2257_s1 + $0x8] sm:$0xff]  ;;  %v60_v3 = vld [vmem:[%s2257_s1] sm:$0xff]  ;;  %vm86_vm0 = vcmask 64512  }
  0x16   :  { %175 = vmatprep.mubr.f32.mxu0 %v2267_v1  ;;  %287 = vmatprep.mubr.f32.mxu1 %v2267_v1  ;;  %v52_v4 = vld [vmem:[%s2256_s0] sm:$0xff]  ;;  %v63_v5 = vld [vmem:[%s2257_s1 + $0x18] sm:$0xff]  ;;  %v62_v6 = vld [vmem:[%s2257_s1 + $0x10] sm:$0xff]  ;;  %vm1626_vm1 = vmmov 0   ;;  %vm1245_vm2 = vcmask 523264   ;;  %vm1319_vm3 = vcmask 261120  }
  0x17   :  { %111 = vmatprep.subr.mxu0 %v61_v2  ;;  %223 = vmatprep.subr.mxu1 %v63_v5  ;;  %v337_v7 = vld [vmem:[#allocation3 + $0x8] sm:$0xff]  ;;  %v339_v9 = vld [vmem:[#allocation3 + $0x18] sm:$0xff]  ;;  %v336_v11 = vld [vmem:[#allocation3] sm:$0xff]  ;;  %vm1370_vm4 = vcmask 7168  }
  0x18   :  { %112 = vmatpush1.msra.mxu0 %v60_v3  ;;  %224 = vmatpush1.msra.mxu1 %v62_v6  ;;  %v341_v8 = vld [vmem:[#allocation3 + $0x28] sm:$0xff]  ;;  %v340_v12 = vld [vmem:[#allocation3 + $0x20] sm:$0xff]  ;;  %v343_v13 = vld [vmem:[#allocation3 + $0x38] sm:$0xff] }
  0x19   :  { %1377 = vmatmul.mubr.msk.f32.vlgmr.msra.gmra.mrb[0].mxu0 %vm86_vm0, %v52_v4  ;;  %1385 = vmatmul.mubr.msk.f32.vlgmr.msra.gmra.mrb[0].mxu1 %vm86_vm0, %v52_v4  ;;  %v1719_v10 = vpack.c.bf16 %v341_v8, %v337_v7  ;;  %v1721_v14 = vpack.c.bf16 %v340_v12, %v336_v11  ;;  %v1723_v15 = vpack.c.bf16 %v343_v13, %v339_v9  ;;  %v338_v16 = vld [vmem:[#allocation3 + $0x10] sm:$0xff]  ;;  %v345_v19 = vld [vmem:[#allocation3 + $0x48] sm:$0xff]  ;;  %v347_v21 = vld [vmem:[#allocation3 + $0x58] sm:$0xff] }
  0x1a   :  { %180 = vmatprep.mubr.f32.mxu0 %v2267_v1  ;;  %293 = vmatprep.mubr.f32.mxu1 %v2267_v1  ;;  %v342_v17 = vld [vmem:[#allocation3 + $0x30] sm:$0xff]  ;;  %v349_v20 = vld [vmem:[#allocation3 + $0x68] sm:$0xff]  ;;  %v344_v24 = vld [vmem:[#allocation3 + $0x40] sm:$0xff] }
  0x1b   :  { %449 = vmatprep.subr.bf16.mxu0 %v1719_v10  ;;  %v1726_v18 = vpack.c.bf16 %v342_v17, %v338_v16  ;;  %490 = vmatprep.subr.bf16.mxu1 %v1723_v15  ;;  %v53_v22 = vld [vmem:[%s2256_s0 + $0x8] sm:$0xff]  ;;  %v1734_v23 = vpack.c.bf16 %v349_v20, %v345_v19  ;;  %v351_v27 = vld [vmem:[#allocation3 + $0x78] sm:$0xff]  ;;  %v346_v28 = vld [vmem:[#allocation3 + $0x50] sm:$0xff] }
  0x1c   :  { %450 = vmatpush1.bf16.msra.mxu0 %v1721_v14  ;;  %v348_v25 = vld [vmem:[#allocation3 + $0x60] sm:$0xff]  ;;  %v350_v29 = vld [vmem:[#allocation3 + $0x70] sm:$0xff]  ;;  %v1741_v30 = vpack.c.bf16 %v351_v27, %v347_v21  ;;  %v353_v32 = vld [vmem:[#allocation3 + $0x88] sm:$0xff] }
  0x1d   :  { %491 = vmatpush1.bf16.msra.mxu1 %v1726_v18  ;;  %1378 = vmatmul.mubr.msk.f32.gmra.mrb[2].mxu0 %vm86_vm0, %v53_v22  ;;  %v1738_v26 = vpack.c.bf16 %v348_v25, %v344_v24  ;;  %v1743_v31 = vpack.c.bf16 %v350_v29, %v346_v28  ;;  %v357_v33 = vld [vmem:[#allocation3 + $0xa8] sm:$0xff]  ;;  %v355_v34 = vld [vmem:[#allocation3 + $0x98] sm:$0xff]  ;;  %v352_v37 = vld [vmem:[#allocation3 + $0x80] sm:$0xff] }
  0x1e   :  { %1386 = vmatmul.mubr.msk.f32.gmra.mrb[2].mxu1 %vm86_vm0, %v53_v22  ;;  %451 = vmatprep.subr.bf16.mxu0 %v1734_v23  ;;  %v54_v35 = vld [vmem:[%s2256_s0 + $0x10] sm:$0xff]  ;;  %v1752_v36 = vpack.c.bf16 %v357_v33, %v353_v32  ;;  %v356_v38 = vld [vmem:[#allocation3 + $0xa0] sm:$0xff]  ;;  %v359_v40 = vld [vmem:[#allocation3 + $0xb8] sm:$0xff] }
  0x1f   :  { %186 = vmatprep.mubr.f32.mxu0 %v2267_v1  ;;  %299 = vmatprep.mubr.f32.mxu1 %v2267_v1  ;;  %v1756_v39 = vpack.c.bf16 %v356_v38, %v352_v37  ;;  %v354_v41 = vld [vmem:[#allocation3 + $0x90] sm:$0xff]  ;;  %v1760_v43 = vpack.c.bf16 %v359_v40, %v355_v34  ;;  %v361_v45 = vld [vmem:[#allocation3 + $0xc8] sm:$0xff]  ;;  %v363_v47 = vld [vmem:[#allocation3 + $0xd8] sm:$0xff] }
  0x20   :  { %452 = vmatpush1.bf16.msra.mxu0 %v1738_v26  ;;  %492 = vmatprep.subr.bf16.mxu1 %v1741_v30  ;;  %v358_v42 = vld [vmem:[#allocation3 + $0xb0] sm:$0xff]  ;;  %v365_v46 = vld [vmem:[#allocation3 + $0xe8] sm:$0xff]  ;;  %v360_v50 = vld [vmem:[#allocation3 + $0xc0] sm:$0xff] }
  0x21   :  { %493 = vmatpush1.bf16.msra.mxu1 %v1743_v31  ;;  %1379 = vmatmul.mubr.msk.f32.gmra.mrb[4].mxu0 %vm86_vm0, %v54_v35  ;;  %v1762_v44 = vpack.c.bf16 %v358_v42, %v354_v41  ;;  %v55_v48 = vld [vmem:[%s2256_s0 + $0x18] sm:$0xff]  ;;  %v1771_v49 = vpack.c.bf16 %v365_v46, %v361_v45  ;;  %v364_v51 = vld [vmem:[#allocation3 + $0xe0] sm:$0xff]  ;;  %v369_v58 = vld [vmem:[#allocation3 + $0x108] sm:$0xff] }
  0x22   :  { %453 = vmatprep.subr.bf16.mxu0 %v1752_v36  ;;  %1387 = vmatmul.mubr.msk.f32.gmra.mrb[4].mxu1 %vm86_vm0, %v54_v35  ;;  %v1775_v52 = vpack.c.bf16 %v364_v51, %v360_v50  ;;  %v367_v53 = vld [vmem:[#allocation3 + $0xf8] sm:$0xff]  ;;  %v362_v54 = vld [vmem:[#allocation3 + $0xd0] sm:$0xff]  ;;  %v373_v59 = vld [vmem:[#allocation3 + $0x128] sm:$0xff] }
  0x23   :  { %192 = vmatprep.mubr.f32.mxu0 %v2267_v1  ;;  %494 = vmatprep.subr.bf16.mxu1 %v1760_v43  ;;  %v366_v55 = vld [vmem:[#allocation3 + $0xf0] sm:$0xff]  ;;  %v1779_v56 = vpack.c.bf16 %v367_v53, %v363_v47  ;;  %v371_v60 = vld [vmem:[#allocation3 + $0x118] sm:$0xff]  ;;  %v1790_v62 = vpack.c.bf16 %v373_v59, %v369_v58  ;;  %v368_v63 = vld [vmem:[#allocation3 + $0x100] sm:$0xff] }
  0x24   :  { %454 = vmatpush1.bf16.msra.mxu0 %v1756_v39  ;;  %305 = vmatprep.mubr.f32.mxu1 %v2267_v1  ;;  %v1781_v57 = vpack.c.bf16 %v366_v55, %v362_v54  ;;  %v56_v61 = vld [vmem:[%s2256_s0 + $0x20] sm:$0xff]  ;;  %v370_v4 = vld [vmem:[#allocation3 + $0x110] sm:$0xff]  ;;  %v57_v8 = vld [vmem:[%s2256_s0 + $0x28] sm:$0xff] }
  0x25   :  { %495 = vmatpush1.bf16.msra.mxu1 %v1762_v44  ;;  %1380 = vmatmul.mubr.msk.f32.gmra.mrb[6].mxu0 %vm86_vm0, %v55_v48  ;;  %v372_v0 = vld [vmem:[#allocation3 + $0x120] sm:$0xff]  ;;  %v375_v3 = vld [vmem:[#allocation3 + $0x138] sm:$0xff]  ;;  %v374_v5 = vld [vmem:[#allocation3 + $0x130] sm:$0xff] }
  0x26   :  { %455 = vmatprep.subr.bf16.mxu0 %v1771_v49  ;;  %1388 = vmatmul.mubr.msk.f32.gmra.mrb[6].mxu1 %vm86_vm0, %v55_v48  ;;  %v1794_v2 = vpack.c.bf16 %v372_v0, %v368_v63  ;;  %v1798_v6 = vpack.c.bf16 %v375_v3, %v371_v60  ;;  %v1800_v7 = vpack.c.bf16 %v374_v5, %v370_v4  ;;  %v377_v9 = vld [vmem:[#allocation3 + $0x148] sm:$0xff]  ;;  %v376_v13 = vld [vmem:[#allocation3 + $0x140] sm:$0xff]  ;;  %v379_v17 = vld [vmem:[#allocation3 + $0x158] sm:$0xff]  ;;  %v2268_v0 = vmov 0  }
  0x27   :  { %198 = vmatprep.mubr.f32.mxu0 %v2267_v1  ;;  %496 = vmatprep.subr.bf16.mxu1 %v1779_v56  ;;  %v381_v11 = vld [vmem:[#allocation3 + $0x168] sm:$0xff]  ;;  %v380_v16 = vld [vmem:[#allocation3 + $0x160] sm:$0xff]  ;;  %v383_v20 = vld [vmem:[#allocation3 + $0x178] sm:$0xff]  ;;  %v66_v3 = vlaneseq }
  0x28   :  { %456 = vmatpush1.bf16.msra.mxu0 %v1775_v52  ;;  %311 = vmatprep.mubr.f32.mxu1 %v2267_v1  ;;  %v1809_v12 = vpack.c.bf16 %v381_v11, %v377_v9  ;;  %v1813_v19 = vpack.c.bf16 %v380_v16, %v376_v13  ;;  %v378_v21 = vld [vmem:[#allocation3 + $0x150] sm:$0xff]  ;;  %v1817_v24 = vpack.c.bf16 %v383_v20, %v379_v17  ;;  %v385_v28 = vld [vmem:[#allocation3 + $0x188] sm:$0xff]  ;;  %v384_v33 = vld [vmem:[#allocation3 + $0x180] sm:$0xff] }
  0x29   :  { %497 = vmatpush1.bf16.msra.mxu1 %v1781_v57  ;;  %1381 = vmatmul.mubr.msk.f32.gmra.mrb[8].mxu0 %vm86_vm0, %v56_v61  ;;  %v382_v22 = vld [vmem:[#allocation3 + $0x170] sm:$0xff]  ;;  %v389_v29 = vld [vmem:[#allocation3 + $0x1a8] sm:$0xff]  ;;  %v388_v34 = vld [vmem:[#allocation3 + $0x1a0] sm:$0xff]  ;;  %v1866_v4 = vshrl.u32 %v66_v3, 7 }
  0x2a   :  { %457 = vmatprep.subr.bf16.mxu0 %v1790_v62  ;;  %1389 = vmatmul.mubr.msk.f32.gmra.mrb[8].mxu1 %vm86_vm0, %v56_v61  ;;  %v1819_v25 = vpack.c.bf16 %v382_v22, %v378_v21  ;;  %v58_v27 = vld [vmem:[%s2256_s0 + $0x30] sm:$0xff]  ;;  %v1826_v32 = vpack.c.bf16 %v389_v29, %v385_v28  ;;  %v387_v35 = vld [vmem:[#allocation3 + $0x198] sm:$0xff]  ;;  %v1830_v37 = vpack.c.bf16 %v388_v34, %v384_v33  ;;  %v392_v51 = vld [vmem:[#allocation3 + $0x1c0] sm:$0xff] }
  0x2b   :  { %204 = vmatprep.mubr.f32.mxu0 %v2267_v1  ;;  %498 = vmatprep.subr.bf16.mxu1 %v1798_v6  ;;  %v391_v38 = vld [vmem:[#allocation3 + $0x1b8] sm:$0xff]  ;;  %v386_v40 = vld [vmem:[#allocation3 + $0x190] sm:$0xff]  ;;  %v393_v47 = vld [vmem:[#allocation3 + $0x1c8] sm:$0xff]  ;;  %v68_v5 = vsub.s32 0, %v1866_v4  ;;  %v76_v9 = vsub.s32 2, %v1866_v4  ;;  %v80_v29 = vsub.s32 3, %v1866_v4 }
  0x2c   :  { %458 = vmatpush1.bf16.msra.mxu0 %v1794_v2  ;;  %317 = vmatprep.mubr.f32.mxu1 %v2267_v1  ;;  %v390_v41 = vld [vmem:[#allocation3 + $0x1b0] sm:$0xff]  ;;  %v1834_v42 = vpack.c.bf16 %v391_v38, %v387_v35  ;;  %v397_v48 = vld [vmem:[#allocation3 + $0x1e8] sm:$0xff]  ;;  %v396_v53 = vld [vmem:[#allocation3 + $0x1e0] sm:$0xff]  ;;  %v72_v3 = vsub.s32 1, %v1866_v4 }
  0x2d   :  { %499 = vmatpush1.bf16.msra.mxu1 %v1800_v7  ;;  %1382 = vmatmul.mubr.msk.f32.gmra.mrb[10].mxu0 %vm86_vm0, %v57_v8  ;;  %v1836_v45 = vpack.c.bf16 %v390_v41, %v386_v40  ;;  %v59_v46 = vld [vmem:[%s2256_s0 + $0x38] sm:$0xff]  ;;  %v1843_v50 = vpack.c.bf16 %v397_v48, %v393_v47  ;;  %v1847_v55 = vpack.c.bf16 %v396_v53, %v392_v51 }
  0x2e   :  { %459 = vmatprep.subr.bf16.mxu0 %v1809_v12  ;;  %1390 = vmatmul.mubr.msk.f32.gmra.mrb[10].mxu1 %vm86_vm0, %v57_v8  ;;  %v395_v54 = vld [vmem:[#allocation3 + $0x1d8] sm:$0xff]  ;;  %v394_v59 = vld [vmem:[#allocation3 + $0x1d0] sm:$0xff] }
  0x2f   :  { %210 = vmatprep.mubr.f32.mxu0 %v2267_v1  ;;  %500 = vmatprep.subr.bf16.mxu1 %v1817_v24  ;;  %v399_v58 = vld [vmem:[#allocation3 + $0x1f8] sm:$0xff]  ;;  %v398_v60 = vld [vmem:[#allocation3 + $0x1f0] sm:$0xff] }
  0x30   :  { %460 = vmatpush1.bf16.msra.mxu0 %v1813_v19  ;;  %323 = vmatprep.mubr.f32.mxu1 %v2267_v1  ;;  %v1851_v61 = vpack.c.bf16 %v399_v58, %v395_v54  ;;  %v1855_v63 = vpack.c.bf16 %v398_v60, %v394_v59  ;;  %v1872_v8 = vld [vmem:[%s2259_s3] sm:$0xf] }
  0x31   :  { %501 = vmatpush1.bf16.msra.mxu1 %v1819_v25  ;;  %1383 = vmatmul.mubr.msk.f32.gmra.mrb[12].mxu0 %vm86_vm0, %v58_v27  ;;  %v1876_v11 = vrot.slane %v1872_v8, %v68_v5  ;;  %v1879_v16 = vrot.slane %v1872_v8, %v76_v9  ;;  %v1885_v34 = vrot.slane %v1872_v8, %v80_v29 }
  0x32   :  { %461 = vmatprep.subr.bf16.mxu0 %v1826_v32  ;;  %1391 = vmatmul.mubr.msk.f32.gmra.mrb[12].mxu1 %vm86_vm0, %v58_v27 }
  0x33   :  { %502 = vmatprep.subr.bf16.mxu1 %v1834_v42  ;;  %216 = vmatprep.mubr.f32.mxu0 %v2267_v1 }
  0x34   :  { %462 = vmatpush1.bf16.msra.mxu0 %v1830_v37  ;;  %329 = vmatprep.mubr.f32.mxu1 %v2267_v1 }
  0x35   :  { %503 = vmatpush1.bf16.msra.mxu1 %v1836_v45  ;;  %1384 = vmatmul.mubr.msk.f32.gmra.mrb[14].mxu0 %vm86_vm0, %v59_v46 }
  0x36   :  { %463 = vmatprep.subr.bf16.mxu0 %v1843_v50  ;;  %1392 = vmatmul.mubr.msk.f32.gmra.mrb[14].mxu1 %vm86_vm0, %v59_v46 }
  0x37   :  { %504 = vmatprep.subr.bf16.mxu1 %v1851_v61  ;;  %481 = vmatprep.mubr.bf16.mxu0 %v2268_v0 }
  0x38   :  { %464 = vmatpush1.bf16.msra.mxu0 %v1847_v55  ;;  %522 = vmatprep.mubr.bf16.mxu1 %v2268_v0 }
  0x39   :  { %505 = vmatpush1.bf16.msra.mxu1 %v1855_v63  ;;  %560 = vmatprep.subr.bf16.mxu0 %v1719_v10 }
  0x3a   :  { %601 = vmatprep.subr.bf16.mxu1 %v1723_v15 }
  0xec   :  { %v177_v13 = vpop.f32.mrb[0].mxu0  ;;  %v289_v21 = vpop.f32.mrb[0].mxu1 }
  0xed   :  { %v178_v17 = vadd.f32 %v177_v13, %v1876_v11  ;;  %v179_v20 = vpop.f32.mrb[1].mxu0  ;;  %v291_v22 = vpop.f32.mrb[1].mxu1  ;;  %v290_v28 = vadd.f32 %v289_v21, %v1879_v16 }
  0xee   :  { %v292_v35 = vadd.f32 %v291_v22, %v1885_v34 }
  0xef   :  { %v1393_v27 = vmul.f32 -1.442695, %v178_v17  ;;  %v1394_v33 = vmul.f32 -1.442695, %v290_v28  ;;  %v73_v17 = vrot.slane %v1872_v8, %v72_v3 }
  0xf0   :  { %v182_v60 = vpop.f32.mrb[2].mxu0 }
  0xf1   :  { %1470 = vpow2.f32 %v1393_v27  ;;  %v295_v5 = vpop.f32.mrb[2].mxu1  ;;  %v184_v9 = vpop.f32.mrb[3].mxu0 }
  0xf2   :  { %1472 = vpow2.f32 %v1394_v33  ;;  %v297_v13 = vpop.f32.mrb[3].mxu1 }
  0xf3   :  { %1474 = vtanh.f32 %v292_v35 }
  0xf4   :  { %v1927_v20 = vpop.f32.mrb[4].mxu0 }
  0xf5   :  { %v190_v21 = vpop.f32.mrb[5].mxu0  ;;  %v1929_v22 = vpop.f32.mrb[4].mxu1 }
  0xf6   :  { %v1931_v27 = vadd.f32 %v190_v21, %v73_v17  ;;  %v1933_v28 = vpop.f32.mrb[5].mxu1 }
  0xf8   :  { %v1935_v29 = vpop.f32.mrb[6].mxu0 }
  0xf9   :  { %v196_v33 = vpop.f32.mrb[7].mxu0  ;;  %v1937_v35 = vpop.f32.mrb[6].mxu1 }
  0xfa   :  { %2270 = vst [vmem:[#allocation6_spill] sm:$0xff] %v1937_v35  ;;  %v1939_v4 = vadd.f32 %v196_v33, %v73_v17 }
  0xfb   :  { %v1471_v38 = vpop.eup %1470 }
  0xfc   :  { %v438_v40 = vadd.f32 1.0, %v1471_v38  ;;  %v1473_v41 = vpop.eup %1472  ;;  %2271 = vst [vmem:[#allocation7_spill] sm:$0xff] %v1939_v4  ;;  %v1941_v38 = vpop.f32.mrb[7].mxu1 }
  0xfd   :  { %v439_v46 = vadd.f32 1.0, %v1473_v41  ;;  %v1475_v47 = vpop.eup %1474  ;;  %2272 = vst [vmem:[#allocation8_spill] sm:$0xff] %v1941_v38  ;;  %v1945_v41 = vpop.f32.mrb[8].mxu1 }
  0xfe   :  { %1476 = vrcp.f32 %v438_v40  ;;  %v1943_v40 = vpop.f32.mrb[8].mxu0  ;;  %2274 = vst [vmem:[#allocation10_spill] sm:$0xff] %v1945_v41 }
  0xff   :  { %1478 = vrcp.f32 %v439_v46  ;;  %2273 = vst [vmem:[#allocation9_spill] sm:$0xff] %v1943_v40  ;;  %v202_v8 = vpop.f32.mrb[9].mxu0 }
 0x100   :  { %v1947_v46 = vadd.f32 %v202_v8, %v73_v17 }
 0x102   :  { %2275 = vst [vmem:[#allocation11_spill] sm:$0xff] %v1947_v46 }
 0x108   :  { %v1477_v48 = vpop.eup %1476 }
 0x109   :  { %v1888_v51 = vmul.f32 %v1477_v48, %v1475_v47  ;;  %v1479_v53 = vpop.eup %1478  ;;  %v1949_v47 = vpop.f32.mrb[9].mxu1 }
 0x10a   :  { %2276 = vst [vmem:[#allocation12_spill] sm:$0xff] %v1949_v47  ;;  %v1951_v48 = vpop.f32.mrb[10].mxu0 }
 0x10b   :  { %1480 = vtanh.f32 %v1888_v51  ;;  %2277 = vst [vmem:[#allocation13_spill] sm:$0xff] %v1951_v48 }
 0x115   :  { %v1481_v54 = vpop.eup %1480 }
 0x116   :  { %v447_v58 = vmul.f32 %v1481_v54, %v1479_v53  ;;  %v208_v53 = vpop.f32.mrb[11].mxu0  ;;  %v1953_v54 = vpop.f32.mrb[10].mxu1 }
 0x117   :  { %2278 = vst [vmem:[#allocation14_spill] sm:$0xff] %v1953_v54  ;;  %v1959_v3 = vpop.f32.mrb[12].mxu0 }
 0x118   :  { %v448_v59 = vpack.c.bf16 %v447_v58, %v447_v58  ;;  %v1955_v58 = vadd.f32 %v208_v53, %v73_v17  ;;  %2281 = vst [vmem:[#allocation17_spill] sm:$0xff] %v1959_v3  ;;  %v214_v21 = vpop.f32.mrb[13].mxu0  ;;  %v296_v3 = vadd.f32 %v295_v5, %v1879_v16 }
 0x119   :  { %v1963_v1 = vadd.f32 %v214_v21, %v73_v17 }
 0x11a   :  { %482 = vmatmul.mubr.bf16.vlgmr.msra.gmra.mrb[16].mxu0 %v448_v59  ;;  %523 = vmatmul.mubr.bf16.vlgmr.msra.gmra.mrb[16].mxu1 %v448_v59  ;;  %2279 = vst [vmem:[#allocation15_spill] sm:$0xff] %v1955_v58  ;;  %v1957_v59 = vpop.f32.mrb[11].mxu1  ;;  %v183_v58 = vadd.f32 %v182_v60, %v1876_v11 }
 0x11b   :  { %561 = vmatpush1.bf16.msra.mxu0 %v1721_v14  ;;  %602 = vmatpush1.bf16.msra.mxu1 %v1726_v18  ;;  %2280 = vst [vmem:[#allocation16_spill] sm:$0xff] %v1957_v59  ;;  %v1961_v33 = vpop.f32.mrb[12].mxu1  ;;  %2283 = vst [vmem:[#allocation19_spill] sm:$0xff] %v1963_v1  ;;  %v185_v59 = vadd.f32 %v184_v9, %v73_v17 }
 0x11c   :  { %562 = vmatprep.subr.bf16.mxu0 %v1734_v23  ;;  %603 = vmatprep.subr.bf16.mxu1 %v1741_v30  ;;  %2282 = vst [vmem:[#allocation18_spill] sm:$0xff] %v1961_v33  ;;  %v1965_v8 = vpop.f32.mrb[13].mxu1  ;;  %v298_v33 = vadd.f32 %v297_v13, %v1885_v34 }
 0x11d   :  { %592 = vmatprep.mubr.bf16.mxu0 %v2268_v0  ;;  %633 = vmatprep.mubr.bf16.mxu1 %v2268_v0  ;;  %2284 = vst [vmem:[#allocation20_spill] sm:$0xff] %v1965_v8  ;;  %v1967_v0 = vpop.f32.mrb[14].mxu0  ;;  %v1969_v48 = vpop.f32.mrb[14].mxu1 }
 0x11e   :  { %2285 = vst [vmem:[#allocation21_spill] sm:$0xff] %v1967_v0  ;;  %v220_v46 = vpop.f32.mrb[15].mxu0  ;;  %2286 = vst [vmem:[#allocation22_spill] sm:$0xff] %v1969_v48  ;;  %v1973_v53 = vpop.f32.mrb[15].mxu1 }
 0x11f   :  { %563 = vmatpush1.bf16.msra.mxu0 %v1738_v26  ;;  %604 = vmatpush1.bf16.msra.mxu1 %v1743_v31  ;;  %v1971_v47 = vadd.f32 %v220_v46, %v73_v17  ;;  %2288 = vst [vmem:[#allocation24_spill] sm:$0xff] %v1973_v53 }
 0x120   :  { %564 = vmatprep.subr.bf16.mxu0 %v1752_v36  ;;  %605 = vmatprep.subr.bf16.mxu1 %v1760_v43 }
 0x121   :  { %2287 = vst [vmem:[#allocation23_spill] sm:$0xff] %v1971_v47 }
 0x123   :  { %565 = vmatpush1.bf16.msra.mxu0 %v1756_v39  ;;  %606 = vmatpush1.bf16.msra.mxu1 %v1762_v44 }
 0x124   :  { %566 = vmatprep.subr.bf16.mxu0 %v1771_v49  ;;  %607 = vmatprep.subr.bf16.mxu1 %v1779_v56 }
 0x127   :  { %567 = vmatpush1.bf16.msra.mxu0 %v1775_v52  ;;  %608 = vmatpush1.bf16.msra.mxu1 %v1781_v57 }
 0x128   :  { %568 = vmatprep.subr.bf16.mxu0 %v1790_v62  ;;  %609 = vmatprep.subr.bf16.mxu1 %v1798_v6 }
 0x12b   :  { %569 = vmatpush1.bf16.msra.mxu0 %v1794_v2  ;;  %610 = vmatpush1.bf16.msra.mxu1 %v1800_v7 }
 0x12c   :  { %570 = vmatprep.subr.bf16.mxu0 %v1809_v12  ;;  %611 = vmatprep.subr.bf16.mxu1 %v1817_v24 }
 0x12f   :  { %571 = vmatpush1.bf16.msra.mxu0 %v1813_v19  ;;  %612 = vmatpush1.bf16.msra.mxu1 %v1819_v25 }
 0x130   :  { %572 = vmatprep.subr.bf16.mxu0 %v1826_v32  ;;  %613 = vmatprep.subr.bf16.mxu1 %v1834_v42 }
 0x133   :  { %573 = vmatpush1.bf16.msra.mxu0 %v1830_v37  ;;  %614 = vmatpush1.bf16.msra.mxu1 %v1836_v45 }
 0x134   :  { %574 = vmatprep.subr.bf16.mxu0 %v1843_v50  ;;  %615 = vmatprep.subr.bf16.mxu1 %v1851_v61 }
 0x137   :  { %575 = vmatpush1.bf16.msra.mxu0 %v1847_v55  ;;  %616 = vmatpush1.bf16.msra.mxu1 %v1855_v63 }
 0x138   :  { %671 = vmatprep.subr.bf16.mxu0 %v1719_v10  ;;  %712 = vmatprep.subr.bf16.mxu1 %v1723_v15 }
 0x1ed   :  { %v483_v21 = vpop.f32.mrb[16].mxu0  ;;  %v524_v1 = vpop.f32.mrb[16].mxu1 }
 0x1ee   :  { %v531_v54 = vadd.f32 %v483_v21, %v183_v58  ;;  %v533_v8 = vadd.f32 %v524_v1, %v296_v3  ;;  %v485_v41 = vpop.f32.mrb[17].mxu0  ;;  %v526_v0 = vpop.f32.mrb[17].mxu1  ;;  %v189_v3 = vadd.f32 %v1927_v20, %v1876_v11 }
 0x1ef   :  { %v532_v40 = vadd.f32 %v485_v41, %v185_v59  ;;  %v534_v4 = vadd.f32 %v526_v0, %v298_v33  ;;  %v487_v48 = vpop.f32.mrb[18].mxu0  ;;  %v528_v46 = vpop.f32.mrb[18].mxu1  ;;  %v302_v33 = vadd.f32 %v1929_v22, %v1879_v16 }
 0x1f0   :  { %v1395_v47 = vmul.f32 -1.442695, %v531_v54  ;;  %v488_v38 = vpop.f32.mrb[19].mxu0  ;;  %v529_v53 = vpop.f32.mrb[19].mxu1  ;;  %v1397_v60 = vmul.f32 -1.442695, %v533_v8  ;;  %v304_v8 = vadd.f32 %v1933_v28, %v1885_v34 }
 0x1f1   :  { %v1396_v35 = vmul.f32 -1.442695, %v532_v40 }
 0x1f2   :  { %1482 = vpow2.f32 %v1395_v47 }
 0x1f3   :  { %1484 = vpow2.f32 %v1396_v35 }
 0x1f4   :  { %1486 = vtanh.f32 %v534_v4 }
 0x1f5   :  { %1488 = vpow2.f32 %v1397_v60 }
 0x1fc   :  { %v1483_v5 = vpop.eup %1482 }
 0x1fd   :  { %v544_v9 = vadd.f32 1.0, %v1483_v5  ;;  %v1485_v13 = vpop.eup %1484 }
 0x1fe   :  { %v545_v1 = vadd.f32 1.0, %v1485_v13  ;;  %v1487_v17 = vpop.eup %1486 }
 0x1ff   :  { %1490 = vrcp.f32 %v544_v9  ;;  %v1489_v41 = vpop.eup %1488 }
 0x200   :  { %1492 = vrcp.f32 %v545_v1  ;;  %v546_v54 = vadd.f32 1.0, %v1489_v41 }
 0x202   :  { %1494 = vrcp.f32 %v546_v54 }
 0x209   :  { %v1491_v0 = vpop.eup %1490 }
 0x20a   :  { %v555_v48 = vmul.f32 %v1491_v0, %v1487_v17  ;;  %v1493_v58 = vpop.eup %1492 }
 0x20b   :  { %v554_v38 = vmul.f32 %v1493_v58, %v1888_v51  ;;  %v2289_v51 = vmov 0  }
 0x20c   :  { %v1495_v35 = vpop.eup %1494 }
 0x20d   :  { %v1979_v40 = vadd.f32 %v555_v48, %v554_v38 }
 0x20f   :  { %1496 = vtanh.f32 %v1979_v40 }
 0x219   :  { %v1497_v4 = vpop.eup %1496 }
 0x21a   :  { %v558_v47 = vmul.f32 %v1497_v4, %v1495_v35 }
 0x21c   :  { %v559_v59 = vpack.c.bf16 %v558_v47, %v558_v47 }
 0x21e   :  { %593 = vmatmul.mubr.bf16.vlgmr.msra.gmra.mrb[20].mxu0 %v559_v59  ;;  %634 = vmatmul.mubr.bf16.vlgmr.msra.gmra.mrb[20].mxu1 %v559_v59 }
 0x21f   :  { %672 = vmatpush1.bf16.msra.mxu0 %v1721_v14  ;;  %713 = vmatpush1.bf16.msra.mxu1 %v1726_v18 }
 0x220   :  { %673 = vmatprep.subr.bf16.mxu0 %v1734_v23  ;;  %714 = vmatprep.subr.bf16.mxu1 %v1741_v30 }
 0x221   :  { %703 = vmatprep.mubr.bf16.mxu0 %v2289_v51  ;;  %744 = vmatprep.mubr.bf16.mxu1 %v2289_v51 }
 0x223   :  { %674 = vmatpush1.bf16.msra.mxu0 %v1738_v26  ;;  %715 = vmatpush1.bf16.msra.mxu1 %v1743_v31 }
 0x224   :  { %675 = vmatprep.subr.bf16.mxu0 %v1752_v36  ;;  %716 = vmatprep.subr.bf16.mxu1 %v1760_v43 }
 0x227   :  { %676 = vmatpush1.bf16.msra.mxu0 %v1756_v39  ;;  %717 = vmatpush1.bf16.msra.mxu1 %v1762_v44 }
 0x228   :  { %677 = vmatprep.subr.bf16.mxu0 %v1771_v49  ;;  %718 = vmatprep.subr.bf16.mxu1 %v1779_v56 }
 0x22b   :  { %678 = vmatpush1.bf16.msra.mxu0 %v1775_v52  ;;  %719 = vmatpush1.bf16.msra.mxu1 %v1781_v57 }
 0x22c   :  { %679 = vmatprep.subr.bf16.mxu0 %v1790_v62  ;;  %720 = vmatprep.subr.bf16.mxu1 %v1798_v6 }
 0x22f   :  { %680 = vmatpush1.bf16.msra.mxu0 %v1794_v2  ;;  %721 = vmatpush1.bf16.msra.mxu1 %v1800_v7 }
 0x230   :  { %681 = vmatprep.subr.bf16.mxu0 %v1809_v12  ;;  %722 = vmatprep.subr.bf16.mxu1 %v1817_v24 }
 0x233   :  { %682 = vmatpush1.bf16.msra.mxu0 %v1813_v19  ;;  %723 = vmatpush1.bf16.msra.mxu1 %v1819_v25 }
 0x234   :  { %683 = vmatprep.subr.bf16.mxu0 %v1826_v32  ;;  %724 = vmatprep.subr.bf16.mxu1 %v1834_v42 }
 0x237   :  { %684 = vmatpush1.bf16.msra.mxu0 %v1830_v37  ;;  %725 = vmatpush1.bf16.msra.mxu1 %v1836_v45 }
 0x238   :  { %685 = vmatprep.subr.bf16.mxu0 %v1843_v50  ;;  %726 = vmatprep.subr.bf16.mxu1 %v1851_v61 }
 0x23b   :  { %686 = vmatpush1.bf16.msra.mxu0 %v1847_v55  ;;  %727 = vmatpush1.bf16.msra.mxu1 %v1855_v63 }
 0x23c   :  { %782 = vmatprep.subr.bf16.mxu0 %v1719_v10  ;;  %823 = vmatprep.subr.bf16.mxu1 %v1723_v15 }
 0x2f1   :  { %v594_v53 = vpop.f32.mrb[20].mxu0  ;;  %v635_v21 = vpop.f32.mrb[20].mxu1 }
 0x2f2   :  { %v642_v46 = vadd.f32 %v594_v53, %v189_v3  ;;  %v644_v60 = vadd.f32 %v635_v21, %v302_v33  ;;  %v596_v5 = vpop.f32.mrb[21].mxu0  ;;  %v637_v9 = vpop.f32.mrb[21].mxu1 }
 0x2f3   :  { %v643_v13 = vadd.f32 %v596_v5, %v1931_v27  ;;  %v645_v1 = vadd.f32 %v637_v9, %v304_v8  ;;  %v598_v17 = vpop.f32.mrb[22].mxu0  ;;  %v639_v41 = vpop.f32.mrb[22].mxu1  ;;  %v2290_v9 = vld [vmem:[#allocation6_spill] sm:$0xff] }
 0x2f4   :  { %v1398_v0 = vmul.f32 -1.442695, %v642_v46  ;;  %v599_v48 = vpop.f32.mrb[23].mxu0  ;;  %v640_v20 = vpop.f32.mrb[23].mxu1  ;;  %v1400_v22 = vmul.f32 -1.442695, %v644_v60 }
 0x2f5   :  { %v1399_v58 = vmul.f32 -1.442695, %v643_v13  ;;  %v308_v13 = vadd.f32 %v2290_v9, %v1879_v16 }
 0x2f6   :  { %1498 = vpow2.f32 %v1398_v0 }
 0x2f7   :  { %1500 = vpow2.f32 %v1399_v58 }
 0x2f8   :  { %1502 = vtanh.f32 %v645_v1  ;;  %v2291_v1 = vld [vmem:[#allocation8_spill] sm:$0xff] }
 0x2f9   :  { %1504 = vpow2.f32 %v1400_v22  ;;  %v310_v17 = vadd.f32 %v2291_v1, %v1885_v34 }
 0x300   :  { %v1499_v54 = vpop.eup %1498 }
 0x301   :  { %v655_v28 = vadd.f32 1.0, %v1499_v54  ;;  %v1501_v38 = vpop.eup %1500  ;;  %v2292_v54 = vld [vmem:[#allocation7_spill] sm:$0xff] }
 0x302   :  { %v656_v35 = vadd.f32 1.0, %v1501_v38  ;;  %v1503_v4 = vpop.eup %1502 }
 0x303   :  { %1506 = vrcp.f32 %v655_v28  ;;  %v1505_v27 = vpop.eup %1504 }
 0x304   :  { %1508 = vrcp.f32 %v656_v35  ;;  %v657_v33 = vadd.f32 1.0, %v1505_v27 }
 0x306   :  { %1510 = vrcp.f32 %v657_v33 }
 0x30d   :  { %v1507_v47 = vpop.eup %1506 }
 0x30e   :  { %v666_v59 = vmul.f32 %v1507_v47, %v1503_v4  ;;  %v1509_v3 = vpop.eup %1508 }
 0x30f   :  { %v665_v8 = vmul.f32 %v1509_v3, %v1979_v40  ;;  %v195_v40 = vadd.f32 %v1935_v29, %v1876_v11 }
 0x310   :  { %v1511_v21 = vpop.eup %1510 }
 0x311   :  { %v2024_v53 = vadd.f32 %v666_v59, %v665_v8 }
 0x313   :  { %1512 = vtanh.f32 %v2024_v53 }
 0x31d   :  { %v1513_v46 = vpop.eup %1512 }
 0x31e   :  { %v669_v60 = vmul.f32 %v1513_v46, %v1511_v21 }
 0x320   :  { %v670_v5 = vpack.c.bf16 %v669_v60, %v669_v60 }
 0x322   :  { %704 = vmatmul.mubr.bf16.vlgmr.msra.gmra.mrb[24].mxu0 %v670_v5  ;;  %745 = vmatmul.mubr.bf16.vlgmr.msra.gmra.mrb[24].mxu1 %v670_v5 }
 0x323   :  { %783 = vmatpush1.bf16.msra.mxu0 %v1721_v14  ;;  %824 = vmatpush1.bf16.msra.mxu1 %v1726_v18 }
 0x324   :  { %784 = vmatprep.subr.bf16.mxu0 %v1734_v23  ;;  %825 = vmatprep.subr.bf16.mxu1 %v1741_v30 }
 0x325   :  { %814 = vmatprep.mubr.bf16.mxu0 %v2289_v51  ;;  %855 = vmatprep.mubr.bf16.mxu1 %v2289_v51 }
 0x327   :  { %785 = vmatpush1.bf16.msra.mxu0 %v1738_v26  ;;  %826 = vmatpush1.bf16.msra.mxu1 %v1743_v31 }
 0x328   :  { %786 = vmatprep.subr.bf16.mxu0 %v1752_v36  ;;  %827 = vmatprep.subr.bf16.mxu1 %v1760_v43 }
 0x32b   :  { %787 = vmatpush1.bf16.msra.mxu0 %v1756_v39  ;;  %828 = vmatpush1.bf16.msra.mxu1 %v1762_v44 }
 0x32c   :  { %788 = vmatprep.subr.bf16.mxu0 %v1771_v49  ;;  %829 = vmatprep.subr.bf16.mxu1 %v1779_v56 }
 0x32f   :  { %789 = vmatpush1.bf16.msra.mxu0 %v1775_v52  ;;  %830 = vmatpush1.bf16.msra.mxu1 %v1781_v57 }
 0x330   :  { %790 = vmatprep.subr.bf16.mxu0 %v1790_v62  ;;  %831 = vmatprep.subr.bf16.mxu1 %v1798_v6 }
 0x333   :  { %791 = vmatpush1.bf16.msra.mxu0 %v1794_v2  ;;  %832 = vmatpush1.bf16.msra.mxu1 %v1800_v7 }
 0x334   :  { %792 = vmatprep.subr.bf16.mxu0 %v1809_v12  ;;  %833 = vmatprep.subr.bf16.mxu1 %v1817_v24 }
 0x337   :  { %793 = vmatpush1.bf16.msra.mxu0 %v1813_v19  ;;  %834 = vmatpush1.bf16.msra.mxu1 %v1819_v25 }
 0x338   :  { %794 = vmatprep.subr.bf16.mxu0 %v1826_v32  ;;  %835 = vmatprep.subr.bf16.mxu1 %v1834_v42 }
 0x33b   :  { %795 = vmatpush1.bf16.msra.mxu0 %v1830_v37  ;;  %836 = vmatpush1.bf16.msra.mxu1 %v1836_v45 }
 0x33c   :  { %796 = vmatprep.subr.bf16.mxu0 %v1843_v50  ;;  %837 = vmatprep.subr.bf16.mxu1 %v1851_v61 }
 0x33f   :  { %797 = vmatpush1.bf16.msra.mxu0 %v1847_v55  ;;  %838 = vmatpush1.bf16.msra.mxu1 %v1855_v63 }
 0x340   :  { %893 = vmatprep.subr.bf16.mxu0 %v1719_v10  ;;  %934 = vmatprep.subr.bf16.mxu1 %v1723_v15 }
 0x3f5   :  { %v705_v41 = vpop.f32.mrb[24].mxu0  ;;  %v746_v0 = vpop.f32.mrb[24].mxu1 }
 0x3f6   :  { %v753_v48 = vadd.f32 %v705_v41, %v195_v40  ;;  %v755_v20 = vadd.f32 %v746_v0, %v308_v13  ;;  %v707_v58 = vpop.f32.mrb[25].mxu0  ;;  %v748_v22 = vpop.f32.mrb[25].mxu1 }
 0x3f7   :  { %v754_v28 = vadd.f32 %v707_v58, %v2292_v54  ;;  %v756_v38 = vadd.f32 %v748_v22, %v310_v17  ;;  %v709_v35 = vpop.f32.mrb[26].mxu0  ;;  %v750_v4 = vpop.f32.mrb[26].mxu1  ;;  %v2294_v54 = vld [vmem:[#allocation10_spill] sm:$0xff] }
 0x3f8   :  { %v1401_v27 = vmul.f32 -1.442695, %v753_v48  ;;  %v710_v47 = vpop.f32.mrb[27].mxu0  ;;  %v751_v29 = vpop.f32.mrb[27].mxu1  ;;  %v1403_v3 = vmul.f32 -1.442695, %v755_v20 }
 0x3f9   :  { %v1402_v59 = vmul.f32 -1.442695, %v754_v28  ;;  %v314_v28 = vadd.f32 %v2294_v54, %v1879_v16 }
 0x3fa   :  { %1514 = vpow2.f32 %v1401_v27 }
 0x3fb   :  { %1516 = vpow2.f32 %v1402_v59 }
 0x3fc   :  { %1518 = vtanh.f32 %v756_v38  ;;  %v2295_v38 = vld [vmem:[#allocation12_spill] sm:$0xff] }
 0x3fd   :  { %1520 = vpow2.f32 %v1403_v3  ;;  %v316_v35 = vadd.f32 %v2295_v38, %v1885_v34 }
 0x404   :  { %v1515_v33 = vpop.eup %1514 }
 0x405   :  { %v766_v8 = vadd.f32 1.0, %v1515_v33  ;;  %v1517_v21 = vpop.eup %1516  ;;  %v2296_v33 = vld [vmem:[#allocation11_spill] sm:$0xff] }
 0x406   :  { %v767_v46 = vadd.f32 1.0, %v1517_v21  ;;  %v1519_v60 = vpop.eup %1518 }
 0x407   :  { %1522 = vrcp.f32 %v766_v8  ;;  %v1521_v5 = vpop.eup %1520 }
 0x408   :  { %1524 = vrcp.f32 %v767_v46  ;;  %v768_v1 = vadd.f32 1.0, %v1521_v5 }
 0x40a   :  { %1526 = vrcp.f32 %v768_v1 }
 0x411   :  { %v1523_v40 = vpop.eup %1522 }
 0x412   :  { %v777_v9 = vmul.f32 %v1523_v40, %v1519_v60  ;;  %v1525_v13 = vpop.eup %1524 }
 0x413   :  { %v776_v17 = vmul.f32 %v1525_v13, %v2024_v53  ;;  %v2293_v53 = vld [vmem:[#allocation9_spill] sm:$0xff] }
 0x414   :  { %v1527_v0 = vpop.eup %1526  ;;  %v201_v22 = vadd.f32 %v2293_v53, %v1876_v11 }
 0x415   :  { %v2069_v41 = vadd.f32 %v777_v9, %v776_v17 }
 0x417   :  { %1528 = vtanh.f32 %v2069_v41 }
 0x421   :  { %v1529_v48 = vpop.eup %1528 }
 0x422   :  { %v780_v20 = vmul.f32 %v1529_v48, %v1527_v0 }
 0x424   :  { %v781_v58 = vpack.c.bf16 %v780_v20, %v780_v20 }
 0x426   :  { %815 = vmatmul.mubr.bf16.vlgmr.msra.gmra.mrb[28].mxu0 %v781_v58  ;;  %856 = vmatmul.mubr.bf16.vlgmr.msra.gmra.mrb[28].mxu1 %v781_v58 }
 0x427   :  { %894 = vmatpush1.bf16.msra.mxu0 %v1721_v14  ;;  %935 = vmatpush1.bf16.msra.mxu1 %v1726_v18 }
 0x428   :  { %895 = vmatprep.subr.bf16.mxu0 %v1734_v23  ;;  %936 = vmatprep.subr.bf16.mxu1 %v1741_v30 }
 0x429   :  { %925 = vmatprep.mubr.bf16.mxu0 %v2289_v51  ;;  %966 = vmatprep.mubr.bf16.mxu1 %v2289_v51 }
 0x42b   :  { %896 = vmatpush1.bf16.msra.mxu0 %v1738_v26  ;;  %937 = vmatpush1.bf16.msra.mxu1 %v1743_v31 }
 0x42c   :  { %897 = vmatprep.subr.bf16.mxu0 %v1752_v36  ;;  %938 = vmatprep.subr.bf16.mxu1 %v1760_v43 }
 0x42f   :  { %898 = vmatpush1.bf16.msra.mxu0 %v1756_v39  ;;  %939 = vmatpush1.bf16.msra.mxu1 %v1762_v44 }
 0x430   :  { %899 = vmatprep.subr.bf16.mxu0 %v1771_v49  ;;  %940 = vmatprep.subr.bf16.mxu1 %v1779_v56 }
 0x433   :  { %900 = vmatpush1.bf16.msra.mxu0 %v1775_v52  ;;  %941 = vmatpush1.bf16.msra.mxu1 %v1781_v57 }
 0x434   :  { %901 = vmatprep.subr.bf16.mxu0 %v1790_v62  ;;  %942 = vmatprep.subr.bf16.mxu1 %v1798_v6 }
 0x437   :  { %902 = vmatpush1.bf16.msra.mxu0 %v1794_v2  ;;  %943 = vmatpush1.bf16.msra.mxu1 %v1800_v7 }
 0x438   :  { %903 = vmatprep.subr.bf16.mxu0 %v1809_v12  ;;  %944 = vmatprep.subr.bf16.mxu1 %v1817_v24 }
 0x43b   :  { %904 = vmatpush1.bf16.msra.mxu0 %v1813_v19  ;;  %945 = vmatpush1.bf16.msra.mxu1 %v1819_v25 }
 0x43c   :  { %905 = vmatprep.subr.bf16.mxu0 %v1826_v32  ;;  %946 = vmatprep.subr.bf16.mxu1 %v1834_v42 }
 0x43f   :  { %906 = vmatpush1.bf16.msra.mxu0 %v1830_v37  ;;  %947 = vmatpush1.bf16.msra.mxu1 %v1836_v45 }
 0x440   :  { %907 = vmatprep.subr.bf16.mxu0 %v1843_v50  ;;  %948 = vmatprep.subr.bf16.mxu1 %v1851_v61 }
 0x443   :  { %908 = vmatpush1.bf16.msra.mxu0 %v1847_v55  ;;  %949 = vmatpush1.bf16.msra.mxu1 %v1855_v63 }
 0x444   :  { %1004 = vmatprep.subr.bf16.mxu0 %v1719_v10  ;;  %1045 = vmatprep.subr.bf16.mxu1 %v1723_v15 }
 0x4f9   :  { %v816_v4 = vpop.f32.mrb[28].mxu0  ;;  %v857_v27 = vpop.f32.mrb[28].mxu1 }
 0x4fa   :  { %v864_v47 = vadd.f32 %v816_v4, %v201_v22  ;;  %v866_v29 = vadd.f32 %v857_v27, %v314_v28  ;;  %v818_v59 = vpop.f32.mrb[29].mxu0  ;;  %v859_v3 = vpop.f32.mrb[29].mxu1 }
 0x4fb   :  { %v865_v8 = vadd.f32 %v818_v59, %v2296_v33  ;;  %v867_v21 = vadd.f32 %v859_v3, %v316_v35  ;;  %v820_v46 = vpop.f32.mrb[30].mxu0  ;;  %v861_v60 = vpop.f32.mrb[30].mxu1  ;;  %v2298_v33 = vld [vmem:[#allocation14_spill] sm:$0xff] }
 0x4fc   :  { %v1404_v5 = vmul.f32 -1.442695, %v864_v47  ;;  %v821_v40 = vpop.f32.mrb[31].mxu0  ;;  %v862_v9 = vpop.f32.mrb[31].mxu1  ;;  %v1406_v1 = vmul.f32 -1.442695, %v866_v29 }
 0x4fd   :  { %v1405_v13 = vmul.f32 -1.442695, %v865_v8  ;;  %v320_v8 = vadd.f32 %v2298_v33, %v1879_v16 }
 0x4fe   :  { %1530 = vpow2.f32 %v1404_v5 }
 0x4ff   :  { %1532 = vpow2.f32 %v1405_v13 }
 0x500   :  { %1534 = vtanh.f32 %v867_v21  ;;  %v2299_v21 = vld [vmem:[#allocation16_spill] sm:$0xff] }
 0x501   :  { %1536 = vpow2.f32 %v1406_v1  ;;  %v322_v46 = vadd.f32 %v2299_v21, %v1885_v34 }
 0x508   :  { %v1531_v17 = vpop.eup %1530 }
 0x509   :  { %v877_v0 = vadd.f32 1.0, %v1531_v17  ;;  %v1533_v48 = vpop.eup %1532  ;;  %v2300_v17 = vld [vmem:[#allocation15_spill] sm:$0xff] }
 0x50a   :  { %v878_v20 = vadd.f32 1.0, %v1533_v48  ;;  %v1535_v58 = vpop.eup %1534 }
 0x50b   :  { %1538 = vrcp.f32 %v877_v0  ;;  %v1537_v53 = vpop.eup %1536 }
 0x50c   :  { %1540 = vrcp.f32 %v878_v20  ;;  %v879_v38 = vadd.f32 1.0, %v1537_v53 }
 0x50e   :  { %1542 = vrcp.f32 %v879_v38 }
 0x515   :  { %v1539_v22 = vpop.eup %1538 }
 0x516   :  { %v888_v54 = vmul.f32 %v1539_v22, %v1535_v58  ;;  %v1541_v28 = vpop.eup %1540 }
 0x517   :  { %v887_v35 = vmul.f32 %v1541_v28, %v2069_v41  ;;  %v2297_v41 = vld [vmem:[#allocation13_spill] sm:$0xff] }
 0x518   :  { %v1543_v27 = vpop.eup %1542  ;;  %v207_v3 = vadd.f32 %v2297_v41, %v1876_v11 }
 0x519   :  { %v2114_v4 = vadd.f32 %v888_v54, %v887_v35 }
 0x51b   :  { %1544 = vtanh.f32 %v2114_v4 }
 0x525   :  { %v1545_v47 = vpop.eup %1544 }
 0x526   :  { %v891_v29 = vmul.f32 %v1545_v47, %v1543_v27 }
 0x528   :  { %v892_v59 = vpack.c.bf16 %v891_v29, %v891_v29 }
 0x52a   :  { %926 = vmatmul.mubr.bf16.vlgmr.msra.gmra.mrb[32].mxu0 %v892_v59  ;;  %967 = vmatmul.mubr.bf16.vlgmr.msra.gmra.mrb[32].mxu1 %v892_v59 }
 0x52b   :  { %1005 = vmatpush1.bf16.msra.mxu0 %v1721_v14  ;;  %1046 = vmatpush1.bf16.msra.mxu1 %v1726_v18 }
 0x52c   :  { %1006 = vmatprep.subr.bf16.mxu0 %v1734_v23  ;;  %1047 = vmatprep.subr.bf16.mxu1 %v1741_v30 }
 0x52d   :  { %1036 = vmatprep.mubr.bf16.mxu0 %v2289_v51  ;;  %1077 = vmatprep.mubr.bf16.mxu1 %v2289_v51 }
 0x52f   :  { %1007 = vmatpush1.bf16.msra.mxu0 %v1738_v26  ;;  %1048 = vmatpush1.bf16.msra.mxu1 %v1743_v31 }
 0x530   :  { %1008 = vmatprep.subr.bf16.mxu0 %v1752_v36  ;;  %1049 = vmatprep.subr.bf16.mxu1 %v1760_v43 }
 0x533   :  { %1009 = vmatpush1.bf16.msra.mxu0 %v1756_v39  ;;  %1050 = vmatpush1.bf16.msra.mxu1 %v1762_v44 }
 0x534   :  { %1010 = vmatprep.subr.bf16.mxu0 %v1771_v49  ;;  %1051 = vmatprep.subr.bf16.mxu1 %v1779_v56 }
 0x537   :  { %1011 = vmatpush1.bf16.msra.mxu0 %v1775_v52  ;;  %1052 = vmatpush1.bf16.msra.mxu1 %v1781_v57 }
 0x538   :  { %1012 = vmatprep.subr.bf16.mxu0 %v1790_v62  ;;  %1053 = vmatprep.subr.bf16.mxu1 %v1798_v6 }
 0x53b   :  { %1013 = vmatpush1.bf16.msra.mxu0 %v1794_v2  ;;  %1054 = vmatpush1.bf16.msra.mxu1 %v1800_v7 }
 0x53c   :  { %1014 = vmatprep.subr.bf16.mxu0 %v1809_v12  ;;  %1055 = vmatprep.subr.bf16.mxu1 %v1817_v24 }
 0x53f   :  { %1015 = vmatpush1.bf16.msra.mxu0 %v1813_v19  ;;  %1056 = vmatpush1.bf16.msra.mxu1 %v1819_v25 }
 0x540   :  { %1016 = vmatprep.subr.bf16.mxu0 %v1826_v32  ;;  %1057 = vmatprep.subr.bf16.mxu1 %v1834_v42 }
 0x543   :  { %1017 = vmatpush1.bf16.msra.mxu0 %v1830_v37  ;;  %1058 = vmatpush1.bf16.msra.mxu1 %v1836_v45 }
 0x544   :  { %1018 = vmatprep.subr.bf16.mxu0 %v1843_v50  ;;  %1059 = vmatprep.subr.bf16.mxu1 %v1851_v61 }
 0x547   :  { %1019 = vmatpush1.bf16.msra.mxu0 %v1847_v55  ;;  %1060 = vmatpush1.bf16.msra.mxu1 %v1855_v63 }
 0x548   :  { %1115 = vmatprep.subr.bf16.mxu0 %v1719_v10  ;;  %1156 = vmatprep.subr.bf16.mxu1 %v1723_v15 }
 0x5fd   :  { %v927_v60 = vpop.f32.mrb[32].mxu0  ;;  %v968_v5 = vpop.f32.mrb[32].mxu1 }
 0x5fe   :  { %v975_v40 = vadd.f32 %v927_v60, %v207_v3  ;;  %v977_v9 = vadd.f32 %v968_v5, %v320_v8  ;;  %v929_v13 = vpop.f32.mrb[33].mxu0  ;;  %v970_v1 = vpop.f32.mrb[33].mxu1 }
 0x5ff   :  { %v976_v0 = vadd.f32 %v929_v13, %v2300_v17  ;;  %v978_v10 = vadd.f32 %v970_v1, %v322_v46  ;;  %v931_v48 = vpop.f32.mrb[34].mxu0  ;;  %v972_v15 = vpop.f32.mrb[34].mxu1 }
 0x600   :  { %v1407_v20 = vmul.f32 -1.442695, %v975_v40  ;;  %v932_v58 = vpop.f32.mrb[35].mxu0  ;;  %v973_v53 = vpop.f32.mrb[35].mxu1  ;;  %v1409_v54 = vmul.f32 -1.442695, %v977_v9 }
 0x601   :  { %v1408_v22 = vmul.f32 -1.442695, %v976_v0  ;;  %v1230_v48 = vld [vmem:[%s2260_s4] sm:$0xff]  ;;  %v1231_v15 = vld [vmem:[%s2260_s4 + $0x8] sm:$0xff]  ;;  %v1625_v58 = vmov 0.0|0.0  }
 0x602   :  { %1546 = vpow2.f32 %v1407_v20  ;;  %v1232_v20 = vld [vmem:[%s2260_s4 + $0x10] sm:$0xff]  ;;  %v1451_v53 = vpack.c.bf16 %v1231_v15, %v1230_v48 }
 0x603   :  { %1548 = vpow2.f32 %v1408_v22  ;;  %v1233_v22 = vld [vmem:[%s2260_s4 + $0x18] sm:$0xff] }
 0x604   :  { %1550 = vtanh.f32 %v978_v10 }
 0x605   :  { %1552 = vpow2.f32 %v1409_v54  ;;  %v1454_v54 = vpack.c.bf16 %v1233_v22, %v1232_v20  ;;  %v1419_v22 = vld [vmem:[%s2263_s7] ss:$0 sm:$0xff] }
 0x60c   :  { %v1547_v28 = vpop.eup %1546 }
 0x60d   :  { %v988_v38 = vadd.f32 1.0, %v1547_v28  ;;  %v1549_v35 = vpop.eup %1548  ;;  %v1234_v28 = vld [vmem:[%s2260_s4 + $0x20] sm:$0xff] }
 0x60e   :  { %v989_v27 = vadd.f32 1.0, %v1549_v35  ;;  %v1551_v47 = vpop.eup %1550 }
 0x60f   :  { %1554 = vrcp.f32 %v988_v38  ;;  %v1553_v29 = vpop.eup %1552  ;;  %v1235_v38 = vld [vmem:[%s2260_s4 + $0x28] sm:$0xff] }
 0x610   :  { %1556 = vrcp.f32 %v989_v27  ;;  %v990_v33 = vadd.f32 1.0, %v1553_v29  ;;  %v1457_v35 = vpack.c.bf16 %v1235_v38, %v1234_v28  ;;  %v1236_v27 = vld [vmem:[%s2260_s4 + $0x30] sm:$0xff]  ;;  %v1420_v38 = vld [vmem:[%s2264_s8] ss:$0 sm:$0xff] }
 0x612   :  { %1558 = vrcp.f32 %v990_v33 }
 0x619   :  { %v1555_v59 = vpop.eup %1554 }
 0x61a   :  { %v999_v41 = vmul.f32 %v1555_v59, %v1551_v47  ;;  %v1557_v3 = vpop.eup %1556  ;;  %v1237_v47 = vld [vmem:[%s2260_s4 + $0x38] sm:$0xff]  ;;  %s1627_s4 = smov 64  }
 0x61b   :  { %v998_v8 = vmul.f32 %v1557_v3, %v2114_v4  ;;  %v1460_v29 = vpack.c.bf16 %v1237_v47, %v1236_v27  ;;  %v2305_v59 = vld [vmem:[#allocation21_spill] sm:$0xff]  ;;  %v2306_v3 = vld [vmem:[#allocation22_spill] sm:$0xff] }
 0x61c   :  { %v1559_v46 = vpop.eup %1558  ;;  %v332_v33 = vadd.f32 %v2306_v3, %v1879_v16 }
 0x61d   :  { %v2159_v21 = vadd.f32 %v999_v41, %v998_v8  ;;  %v219_v41 = vadd.f32 %v2305_v59, %v1876_v11  ;;  %v2307_v8 = vld [vmem:[#allocation24_spill] sm:$0xff] }
 0x61f   :  { %1560 = vtanh.f32 %v2159_v21 }
 0x629   :  { %v1561_v60 = vpop.eup %1560 }
 0x62a   :  { %v1002_v5 = vmul.f32 %v1561_v60, %v1559_v46 }
 0x62c   :  { %v1003_v40 = vpack.c.bf16 %v1002_v5, %v1002_v5 }
 0x62e   :  { %1037 = vmatmul.mubr.bf16.vlgmr.msra.gmra.mrb[36].mxu0 %v1003_v40  ;;  %1078 = vmatmul.mubr.bf16.vlgmr.msra.gmra.mrb[36].mxu1 %v1003_v40 }
 0x62f   :  { %1116 = vmatpush1.bf16.msra.mxu0 %v1721_v14  ;;  %1157 = vmatpush1.bf16.msra.mxu1 %v1726_v18  ;;  %v2301_v14 = vld [vmem:[#allocation17_spill] sm:$0xff] }
 0x630   :  { %1117 = vmatprep.subr.bf16.mxu0 %v1734_v23  ;;  %1158 = vmatprep.subr.bf16.mxu1 %v1741_v30  ;;  %v213_v18 = vadd.f32 %v2301_v14, %v1876_v11  ;;  %v2302_v23 = vld [vmem:[#allocation18_spill] sm:$0xff]  ;;  %v2303_v30 = vld [vmem:[#allocation20_spill] sm:$0xff] }
 0x631   :  { %1147 = vmatprep.mubr.bf16.mxu0 %v2289_v51  ;;  %1188 = vmatprep.mubr.bf16.mxu1 %v2289_v51 }
 0x633   :  { %1118 = vmatpush1.bf16.msra.mxu0 %v1738_v26  ;;  %1159 = vmatpush1.bf16.msra.mxu1 %v1743_v31  ;;  %v326_v26 = vadd.f32 %v2302_v23, %v1879_v16  ;;  %v328_v31 = vadd.f32 %v2303_v30, %v1885_v34  ;;  %v2308_v23 = vld [vmem:[#allocation23_spill] sm:$0xff] }
 0x634   :  { %1119 = vmatprep.subr.bf16.mxu0 %v1752_v36  ;;  %1160 = vmatprep.subr.bf16.mxu1 %v1760_v43 }
 0x637   :  { %1120 = vmatpush1.bf16.msra.mxu0 %v1756_v39  ;;  %1161 = vmatpush1.bf16.msra.mxu1 %v1762_v44 }
 0x638   :  { %1121 = vmatprep.subr.bf16.mxu0 %v1771_v49  ;;  %1162 = vmatprep.subr.bf16.mxu1 %v1779_v56  ;;  %v2304_v56 = vld [vmem:[#allocation19_spill] sm:$0xff] }
 0x63b   :  { %1122 = vmatpush1.bf16.msra.mxu0 %v1775_v52  ;;  %1163 = vmatpush1.bf16.msra.mxu1 %v1781_v57 }
 0x63c   :  { %1123 = vmatprep.subr.bf16.mxu0 %v1790_v62  ;;  %1164 = vmatprep.subr.bf16.mxu1 %v1798_v6 }
 0x63f   :  { %1124 = vmatpush1.bf16.msra.mxu0 %v1794_v2  ;;  %1165 = vmatpush1.bf16.msra.mxu1 %v1800_v7 }
 0x640   :  { %1125 = vmatprep.subr.bf16.mxu0 %v1809_v12  ;;  %1166 = vmatprep.subr.bf16.mxu1 %v1817_v24 }
 0x643   :  { %1126 = vmatpush1.bf16.msra.mxu0 %v1813_v19  ;;  %1167 = vmatpush1.bf16.msra.mxu1 %v1819_v25 }
 0x644   :  { %1127 = vmatprep.subr.bf16.mxu0 %v1826_v32  ;;  %1168 = vmatprep.subr.bf16.mxu1 %v1834_v42 }
 0x647   :  { %1128 = vmatpush1.bf16.msra.mxu0 %v1830_v37  ;;  %1169 = vmatpush1.bf16.msra.mxu1 %v1836_v45 }
 0x648   :  { %1129 = vmatprep.subr.bf16.mxu0 %v1843_v50  ;;  %1170 = vmatprep.subr.bf16.mxu1 %v1851_v61 }
 0x64b   :  { %1130 = vmatpush1.bf16.msra.mxu0 %v1847_v55  ;;  %1171 = vmatpush1.bf16.msra.mxu1 %v1855_v63 }
 0x64c   :  { %1450 = vmatprep.subr.bf16.mxu0 %v1625_v58 }
 0x701   :  { %v1038_v36 = vpop.f32.mrb[36].mxu0  ;;  %v1079_v39 = vpop.f32.mrb[36].mxu1 }
 0x702   :  { %v1086_v43 = vadd.f32 %v1038_v36, %v213_v18  ;;  %v1088_v44 = vadd.f32 %v1079_v39, %v326_v26  ;;  %v1040_v49 = vpop.f32.mrb[37].mxu0  ;;  %v1081_v52 = vpop.f32.mrb[37].mxu1 }
 0x703   :  { %v1087_v57 = vadd.f32 %v1040_v49, %v2304_v56  ;;  %v1089_v62 = vadd.f32 %v1081_v52, %v328_v31  ;;  %v1042_v2 = vpop.f32.mrb[38].mxu0  ;;  %v1083_v6 = vpop.f32.mrb[38].mxu1 }
 0x704   :  { %v1410_v7 = vmul.f32 -1.442695, %v1086_v43  ;;  %v1043_v12 = vpop.f32.mrb[39].mxu0  ;;  %v1084_v19 = vpop.f32.mrb[39].mxu1  ;;  %v1412_v25 = vmul.f32 -1.442695, %v1088_v44 }
 0x705   :  { %v1411_v24 = vmul.f32 -1.442695, %v1087_v57 }
 0x706   :  { %1562 = vpow2.f32 %v1410_v7 }
 0x707   :  { %1564 = vpow2.f32 %v1411_v24 }
 0x708   :  { %1566 = vtanh.f32 %v1089_v62 }
 0x709   :  { %1568 = vpow2.f32 %v1412_v25  ;;  %v2309_v25 = vmov 0.0  }
 0x710   :  { %v1563_v32 = vpop.eup %1562 }
 0x711   :  { %v1099_v37 = vadd.f32 1.0, %v1563_v32  ;;  %v1565_v42 = vpop.eup %1564 }
 0x712   :  { %v1100_v45 = vadd.f32 1.0, %v1565_v42  ;;  %v1567_v50 = vpop.eup %1566 }
 0x713   :  { %1570 = vrcp.f32 %v1099_v37  ;;  %v1569_v55 = vpop.eup %1568 }
 0x714   :  { %1572 = vrcp.f32 %v1100_v45  ;;  %v1101_v4 = vadd.f32 1.0, %v1569_v55  ;;  %v1416_v55 = vld [vmem:[%s2261_s5] ss:$0 sm:$0xff] }
 0x716   :  { %1574 = vrcp.f32 %v1101_v4 }
 0x71d   :  { %v1571_v61 = vpop.eup %1570 }
 0x71e   :  { %v1110_v63 = vmul.f32 %v1571_v61, %v1567_v50  ;;  %v1573_v51 = vpop.eup %1572 }
 0x71f   :  { %v1109_v9 = vmul.f32 %v1573_v51, %v2159_v21  ;;  %v334_v21 = vadd.f32 %v2307_v8, %v1885_v34 }
 0x720   :  { %v1575_v1 = vpop.eup %1574 }
 0x721   :  { %v2202_v13 = vadd.f32 %v1110_v63, %v1109_v9 }
 0x723   :  { %1576 = vtanh.f32 %v2202_v13 }
 0x72d   :  { %v1577_v17 = vpop.eup %1576 }
 0x72e   :  { %v1113_v0 = vmul.f32 %v1577_v17, %v1575_v1 }
 0x730   :  { %v1114_v10 = vpack.c.bf16 %v1113_v0, %v1113_v0 }
 0x732   :  { %1148 = vmatmul.mubr.bf16.vlgmr.msra.gmra.mrb[40].mxu0 %v1114_v10  ;;  %1189 = vmatmul.mubr.bf16.vlgmr.msra.gmra.mrb[40].mxu1 %v1114_v10 }
 0x733   :  { %1452 = vmatpush3.bf16.msra.mxu0 %v1451_v53  ;;  %1447 = vmatprep.mubr.msk.f32.mxu0 %vm1626_vm1, %v2309_v25 }
 0x734   :  { %1453 = vmatprep.subr.bf16.mxu0 %v1625_v58 }
 0x737   :  { %1455 = vmatpush3.bf16.msra.mxu0 %v1454_v54 }
 0x738   :  { %1456 = vmatprep.subr.bf16.mxu0 %v1625_v58 }
 0x73b   :  { %1458 = vmatpush3.bf16.msra.mxu0 %v1457_v35 }
 0x73c   :  { %1459 = vmatprep.subr.bf16.mxu0 %v1625_v58  ;;  %v1418_v58 = vld [vmem:[%s2262_s6] ss:$0 sm:$0xff] }
 0x73f   :  { %1461 = vmatpush3.bf16.msra.mxu0 %v1460_v29  ;;  %v1421_v29 = vld [vmem:[#allocation2] ss:$0 sm:$0xff] }
 0x805   :  { %v1149_v46 = vpop.f32.mrb[40].mxu0  ;;  %v1190_v60 = vpop.f32.mrb[40].mxu1 }
 0x806   :  { %v1197_v5 = vadd.f32 %v1149_v46, %v219_v41  ;;  %v1199_v40 = vadd.f32 %v1190_v60, %v332_v33  ;;  %v1151_v14 = vpop.f32.mrb[41].mxu0  ;;  %v1192_v18 = vpop.f32.mrb[41].mxu1 }
 0x807   :  { %v1198_v26 = vadd.f32 %v1151_v14, %v2308_v23  ;;  %v1200_v30 = vadd.f32 %v1192_v18, %v334_v21  ;;  %v1153_v31 = vpop.f32.mrb[42].mxu0  ;;  %v1194_v36 = vpop.f32.mrb[42].mxu1 }
 0x808   :  { %v1413_v39 = vmul.f32 -1.442695, %v1197_v5  ;;  %v1154_v43 = vpop.f32.mrb[43].mxu0  ;;  %v1195_v11 = vpop.f32.mrb[43].mxu1  ;;  %v1415_v16 = vmul.f32 -1.442695, %v1199_v40 }
 0x809   :  { %v1414_v44 = vmul.f32 -1.442695, %v1198_v26 }
 0x80a   :  { %1578 = vpow2.f32 %v1413_v39 }
 0x80b   :  { %1580 = vpow2.f32 %v1414_v44 }
 0x80c   :  { %1582 = vtanh.f32 %v1200_v30 }
 0x80d   :  { %1584 = vpow2.f32 %v1415_v16 }
 0x814   :  { %v1579_v49 = vpop.eup %1578 }
 0x815   :  { %v1210_v34 = vadd.f32 1.0, %v1579_v49  ;;  %v1581_v52 = vpop.eup %1580 }
 0x816   :  { %v1211_v56 = vadd.f32 1.0, %v1581_v52  ;;  %v1583_v57 = vpop.eup %1582 }
 0x817   :  { %1586 = vrcp.f32 %v1210_v34  ;;  %v1585_v62 = vpop.eup %1584 }
 0x818   :  { %1588 = vrcp.f32 %v1211_v56  ;;  %v1212_v12 = vadd.f32 1.0, %v1585_v62 }
 0x81a   :  { %1590 = vrcp.f32 %v1212_v12 }
 0x821   :  { %v1587_v2 = vpop.eup %1586 }
 0x822   :  { %v1221_v6 = vmul.f32 %v1587_v2, %v1583_v57  ;;  %v1589_v7 = vpop.eup %1588 }
 0x823   :  { %v1220_v19 = vmul.f32 %v1589_v7, %v2202_v13 }
 0x824   :  { %v1591_v32 = vpop.eup %1590 }
 0x825   :  { %v1222_v24 = vadd.f32 %v1221_v6, %v1220_v19 }
 0x827   :  { %1592 = vtanh.f32 %v1222_v24 }
 0x831   :  { %v1593_v37 = vpop.eup %1592 }
 0x832   :  { %v1224_v42 = vmul.f32 %v1593_v37, %v1591_v32 }
 0x834   :  { %1226 = vrot.lane.b32.xlu0 %v1224_v42, %s1627_s4 }
 0x8a6   :  { %v1227_v45 = vpop.permute.xlu0 %1226 }
 0x8a7   :  { %v1229_v50 = vadd.f32 %v1227_v45, %v1224_v42 }
 0x8a9   :  { %1448 = vmatmul.mubr.msk.f32.vlgmr.msra.gmra.mrb[44].mxu0 %vm1245_vm2, %v1229_v50 }
 0x97c   :  { %v1315_v61 = vpop.f32.mrb[44].mxu0 }
 0x97d   :  { %v1316_v63 = vadd.f32 %v1416_v55, %v1315_v61  ;;  %v1449_v51 = vpop.f32.mrb[45].mxu0 }
 0x97f   :  { %v1320_v4 = vsel %vm1319_vm3, %v1316_v63, 0.0 }
 0x980   :  { %1321 = vadd.xlane.f32.xlu0 %v1320_v4 }
 0xa0d   :  { %v1322_v9 = vpop.xlane.xlu0 %1321 }
 0xa0e   :  { %v1324_v13 = vmul.f32 0.03125, %v1322_v9 }
 0xa10   :  { %v1325_v1 = vsub.f32 %v1316_v63, %v1324_v13 }
 0xa12   :  { %v1326_v17 = vmul.f32 %v1325_v1, %v1325_v1 }
 0xa14   :  { %v1327_v0 = vsel %vm1319_vm3, %v1326_v17, 0.0 }
 0xa15   :  { %1328 = vadd.xlane.f32.xlu1 %v1327_v0 }
 0xaa2   :  { %v1329_v10 = vpop.xlane.xlu1 %1328 }
 0xaa3   :  { %v1330_v48 = vmul.f32 0.03125, %v1329_v10 }
 0xaa5   :  { %v1331_v15 = vadd.f32 1e-05, %v1330_v48 }
 0xaa7   :  { %1594 = vrsqrt.f32 %v1331_v15 }
 0xab1   :  { %v1595_v20 = vpop.eup %1594 }
 0xab2   :  { %v1333_v53 = vmul.f32 %v1595_v20, %v1325_v1 }
 0xab4   :  { %v1341_v54 = vmul.f32 %v1418_v58, %v1333_v53 }
 0xab6   :  { %v1349_v28 = vadd.f32 %v1419_v22, %v1341_v54 }
 0xab8   :  { %v1350_v35 = vmax.f32 %v1349_v28, 0.0 }
 0xaba   :  { %v1358_v27 = vmul.f32 %v1420_v38, %v1350_v35 }
 0xabc   :  { %v1359_v47 = vsel %vm1319_vm3, %v1358_v27, 0.0 }
 0xabd   :  { %1360 = vadd.xlane.f32.xlu1 %v1359_v47 }
 0xb4a   :  { %v1361_v59 = vpop.xlane.xlu1 %1360 }
 0xb4b   :  { %v1369_v41 = vadd.f32 %v1421_v29, %v1361_v59 }
 0xb4d   :  { %1371 = vst.msk [vmem:[%s2266_s10] sm:$0xff] %vm1370_vm4, %v1369_v41 }
 0xb4e   :  { %1376 = vsyncpa [#allocation4], 1 }

</bundles_post_ra>
